<compile_context>
chip_gen: v7x
topology: tpu7x:2x2x1
jax: 0.10.0
libtpu: 0.0.40
codegen_flags: <defaults>
</compile_context>

<pallas_src>
import math

import jax
import jax.numpy as jnp
from jax.experimental import pallas as pl
from jax.experimental.pallas import tpu as pltpu


O_TILE = 128  # lane tile for output channels (multiple of 128 lanes)


# ----------------------------- Pallas kernel --------------------------------
def _make_conv_kernel(k, H_out, W_out, C, stride, dilation, has_bias, o_tile):
    """Fused im2col + GEMM conv kernel (one batch element x one O tile)."""
    L = H_out * W_out

    def kernel(*refs):
        if has_bias:
            x_ref, w_ref, b_ref, o_ref = refs
        else:
            x_ref, w_ref, o_ref = refs
            b_ref = None

        # Accumulator initialized with the bias (added exactly once, in f32),
        # kept as a value so partial sums stay in vregs / compiler-managed VMEM
        # instead of an explicit read-modify-write scratch buffer.
        if has_bias:
            acc = jnp.broadcast_to(b_ref[...], (L, o_tile)).astype(jnp.float32)
        else:
            acc = jnp.zeros((L, o_tile), jnp.float32)

        # Fused im2col: sum over the k*k taps of shifted GEMMs (unrolled, so
        # the LLO scheduler sees the full dependency chain).
        for kh in range(k):
            for kw in range(k):
                h0 = kh * dilation
                w0 = kw * dilation
                if stride == 1:
                    patch = x_ref[0, h0:h0 + H_out, w0:w0 + W_out, :]
                else:
                    # TODO(synk): strided tap gather; only used when stride > 1.
                    patch = x_ref[0,
                                  pl.ds(h0, H_out, stride=stride),
                                  pl.ds(w0, W_out, stride=stride), :]
                acc = acc + jnp.dot(
                    patch.reshape(L, C),            # (L, C) bf16
                    w_ref[kh * k + kw],             # (C, TO) bf16
                    preferred_element_type=jnp.float32)

        o_ref[0] = acc.astype(o_ref.dtype)

    return kernel


def conv2d_nhwc_fused(xp, w_taps, bias, *, kernel_size, H_out, W_out,
                      stride, dilation, o_tile=O_TILE):
    """Fused im2col + GEMM convolution.

    xp:     (N, H_pad, W_pad, C) bf16 spatially-padded NHWC activations.
    w_taps: (k*k, C, O_pad) bf16 weight, one (C, O) slab per tap, O padded.
    bias:   (1, O_pad) f32 or None.
    Returns (N, H_out*W_out, O_pad) f32.
    """
    N, H_pad, W_pad, C = xp.shape
    kk, _, O_pad = w_taps.shape
    assert O_pad % o_tile == 0
    L = H_out * W_out
    n_o = O_pad // o_tile
    has_bias = bias is not None

    in_specs = [
        pl.BlockSpec((1, H_pad, W_pad, C), lambda n, o: (n, 0, 0, 0)),
        pl.BlockSpec((kk, C, o_tile), lambda n, o: (0, 0, o)),
    ]
    operands = [xp, w_taps]
    if has_bias:
        in_specs.append(pl.BlockSpec((1, o_tile), lambda n, o: (0, o)))
        operands.append(bias)

    kernel = _make_conv_kernel(kernel_size, H_out, W_out, C, stride,
                               dilation, has_bias, o_tile)

    return pl.pallas_call(
        kernel,
        out_shape=jax.ShapeDtypeStruct((N, L, O_pad), jnp.float32),
        grid_spec=pltpu.PrefetchScalarGridSpec(
            num_scalar_prefetch=0,
            grid=(N, n_o),
            in_specs=in_specs,
            out_specs=pl.BlockSpec((1, L, o_tile), lambda n, o: (n, 0, o)),
        ),
        compiler_params=pltpu.CompilerParams(
            dimension_semantics=("parallel", "parallel"),
            vmem_limit_bytes=48 * 1024 * 1024,   # fits v7x's 64 MiB VMEM too
        ),
    )(*operands)


# ------------------------------ Conv2dMem -----------------------------------
class Conv2dMem:
    def __init__(self, in_channels, out_channels, kernel_size,
                 stride=1, padding=0, dilation=1, bias=True,
                 key=jax.random.PRNGKey(0)):
        self.in_channels = in_channels
        self.out_channels = out_channels
        self.kernel_size = kernel_size
        self.stride = stride
        self.padding = padding
        self.dilation = dilation

        wkey, bkey = jax.random.split(key)
        fan_in = in_channels * kernel_size * kernel_size
        # kaiming_uniform_(a=sqrt(5)) -> bound = 1/sqrt(fan_in)
        wbound = 1.0 / math.sqrt(fan_in)
        self.weight = jax.random.uniform(
            wkey, (out_channels, in_channels, kernel_size, kernel_size),
            minval=-wbound, maxval=wbound, dtype=jnp.float32)
        if bias:
            bbound = 1.0 / math.sqrt(fan_in)
            self.bias = jax.random.uniform(
                bkey, (out_channels,), minval=-bbound, maxval=bbound,
                dtype=jnp.float32)
        else:
            self.bias = None

        # Pre-reshaped engine weight: (O, C, kh, kw) -> (kh, kw, C, O)
        # -> (k*k, C, O), O padded to a multiple of 128 lanes, bf16 for the MXU
        # (f32 accumulation inside the kernel).
        O_pad = int(pl.cdiv(out_channels, O_TILE)) * O_TILE
        self.O_pad = O_pad
        w_taps = jnp.transpose(self.weight, (2, 3, 1, 0)).reshape(
            kernel_size * kernel_size, in_channels, out_channels)
        self.w_taps = jnp.pad(
            w_taps, ((0, 0), (0, 0), (0, O_pad - out_channels))
        ).astype(jnp.bfloat16)
        if bias:
            self.bias_pad = jnp.pad(
                self.bias, (0, O_pad - out_channels)
            ).reshape(1, O_pad).astype(jnp.float32)
        else:
            self.bias_pad = None

    def __call__(self, x):
        # x: (N, C, H, W) float32 (NCHW, PyTorch-compatible interface).
        N, C, H, W = x.shape
        k, s, p, d = self.kernel_size, self.stride, self.padding, self.dilation
        H_out = (H + 2 * p - d * (k - 1) - 1) // s + 1
        W_out = (W + 2 * p - d * (k - 1) - 1) // s + 1

        # Boundary layout change only (module contract is NCHW); 1x input pass.
        x_nhwc = jnp.transpose(x, (0, 2, 3, 1))
        xp = jnp.pad(x_nhwc, ((0, 0), (p, p), (p, p), (0, 0))).astype(jnp.bfloat16)

        out = conv2d_nhwc_fused(
            xp, self.w_taps, self.bias_pad,
            kernel_size=k, H_out=H_out, W_out=W_out, stride=s, dilation=d)

        # Drop O padding, fold L back to spatial, return NCHW (1x output pass,
        # fused by XLA with the channel un-pad).
        out = out[:, :, :self.out_channels].reshape(
            N, H_out, W_out, self.out_channels)
        return jnp.transpose(out, (0, 3, 1, 2))


# -------------------------------- main ---------------------------------------
if __name__ == "__main__":
    key = jax.random.PRNGKey(0)
    xkey, pkey = jax.random.split(key)

    N, C, H, W = 2, 4, 16, 16
    O, K = 8, 3
    stride, padding, dilation = 1, 1, 1

    x = jax.random.normal(xkey, (N, C, H, W), dtype=jnp.float32)

    layer = Conv2dMem(C, O, K, stride=stride, padding=padding,
                      dilation=dilation, bias=True, key=pkey)

    y = layer(x)
    y = jax.block_until_ready(y)

    # Cross-check against XLA's conv (ideal conv semantics of the module).
    # The kernel feeds the MXU bf16 operands (f32 accumulation), so round the
    # reference operands to bf16 as well to compare like with like.
    x_bf = x.astype(jnp.bfloat16).astype(jnp.float32)
    w_bf = layer.weight.astype(jnp.bfloat16).astype(jnp.float32)
    ref = jax.lax.conv_general_dilated(
        x_bf, w_bf, window_strides=(stride, stride),
        padding=[(padding, padding), (padding, padding)],
        rhs_dilation=(dilation, dilation),
        dimension_numbers=("NCHW", "OIHW", "NCHW"))
    ref = ref + layer.bias.reshape(1, O, 1, 1)

    assert y.shape == (N, O, H, W), y.shape
    assert jnp.allclose(y, ref, atol=5e-3, rtol=5e-3), float(
        jnp.max(jnp.abs(y - ref)))
    print("KERNEL_OK")
</pallas_src>

<mosaic_0001>
module attributes {stable_mosaic.version = 11 : i64} {
  func.func @kernel(%arg0: i32, %arg1: i32, %arg2: memref<1x18x18x4xbf16, #tpu.memory_space<vmem>>, %arg3: memref<9x4x128xbf16, #tpu.memory_space<vmem>>, %arg4: memref<1x128xf32, #tpu.memory_space<vmem>>, %arg5: memref<1x256x128xf32, #tpu.memory_space<vmem>>) attributes {dimension_semantics = [#tpu.dimension_semantics<parallel>, #tpu.dimension_semantics<parallel>], iteration_bounds = array<i64: 2, 1>, scalar_prefetch = 0 : i64, scratch_operands = 0 : i64, tpu.core_type = #tpu.core_type<tc>, window_params = [{transform_indices = @transform_0, window_bounds = array<i64: 1, 18, 18, 4>}, {transform_indices = @transform_1, window_bounds = array<i64: 9, 4, 128>}, {transform_indices = @transform_2, window_bounds = array<i64: 1, 128>}, {transform_indices = @transform_3, window_bounds = array<i64: 1, 256, 128>}]} {
    %c0 = arith.constant 0 : index
    %c0_0 = arith.constant 0 : index
    %0 = vector.load %arg4[%c0, %c0_0] : memref<1x128xf32, #tpu.memory_space<vmem>>, vector<1x128xf32>
    %1 = vector.shape_cast %0 : vector<1x128xf32> to vector<1x128xf32>
    %2 = vector.broadcast %1 : vector<1x128xf32> to vector<256x128xf32>
    %c0_1 = arith.constant 0 : index
    %c0_2 = arith.constant 0 : index
    %c0_3 = arith.constant 0 : index
    %c0_4 = arith.constant 0 : index
    %3 = vector.load %arg2[%c0_1, %c0_2, %c0_3, %c0_4] : memref<1x18x18x4xbf16, #tpu.memory_space<vmem>>, vector<1x16x16x4xbf16>
    %4 = vector.shape_cast %3 : vector<1x16x16x4xbf16> to vector<16x16x4xbf16>
    %5 = vector.shape_cast %4 : vector<16x16x4xbf16> to vector<256x4xbf16>
    %c0_5 = arith.constant 0 : index
    %c0_6 = arith.constant 0 : index
    %c0_7 = arith.constant 0 : index
    %6 = vector.load %arg3[%c0_5, %c0_6, %c0_7] : memref<9x4x128xbf16, #tpu.memory_space<vmem>>, vector<1x4x128xbf16>
    %7 = vector.shape_cast %6 : vector<1x4x128xbf16> to vector<4x128xbf16>
    %cst = arith.constant dense<0.000000e+00> : vector<256x128xf32>
    %8 = tpu.matmul %5, %7, %cst {dimension_numbers = #tpu.dot_dimension_numbers<[1], [0], [0], [1], [0, 0, 1, 1], [], []>} : vector<256x4xbf16>, vector<4x128xbf16>, vector<256x128xf32> -> vector<256x128xf32>
    %9 = arith.addf %2, %8 : vector<256x128xf32>
    %c0_8 = arith.constant 0 : index
    %c0_9 = arith.constant 0 : index
    %c1 = arith.constant 1 : index
    %c0_10 = arith.constant 0 : index
    %10 = vector.load %arg2[%c0_8, %c0_9, %c1, %c0_10] : memref<1x18x18x4xbf16, #tpu.memory_space<vmem>>, vector<1x16x16x4xbf16>
    %11 = vector.shape_cast %10 : vector<1x16x16x4xbf16> to vector<16x16x4xbf16>
    %12 = vector.shape_cast %11 : vector<16x16x4xbf16> to vector<256x4xbf16>
    %c1_11 = arith.constant 1 : index
    %c0_12 = arith.constant 0 : index
    %c0_13 = arith.constant 0 : index
    %13 = vector.load %arg3[%c1_11, %c0_12, %c0_13] : memref<9x4x128xbf16, #tpu.memory_space<vmem>>, vector<1x4x128xbf16>
    %14 = vector.shape_cast %13 : vector<1x4x128xbf16> to vector<4x128xbf16>
    %cst_14 = arith.constant dense<0.000000e+00> : vector<256x128xf32>
    %15 = tpu.matmul %12, %14, %cst_14 {dimension_numbers = #tpu.dot_dimension_numbers<[1], [0], [0], [1], [0, 0, 1, 1], [], []>} : vector<256x4xbf16>, vector<4x128xbf16>, vector<256x128xf32> -> vector<256x128xf32>
    %16 = arith.addf %9, %15 : vector<256x128xf32>
    %c0_15 = arith.constant 0 : index
    %c0_16 = arith.constant 0 : index
    %c2 = arith.constant 2 : index
    %c0_17 = arith.constant 0 : index
    %17 = vector.load %arg2[%c0_15, %c0_16, %c2, %c0_17] : memref<1x18x18x4xbf16, #tpu.memory_space<vmem>>, vector<1x16x16x4xbf16>
    %18 = vector.shape_cast %17 : vector<1x16x16x4xbf16> to vector<16x16x4xbf16>
    %19 = vector.shape_cast %18 : vector<16x16x4xbf16> to vector<256x4xbf16>
    %c2_18 = arith.constant 2 : index
    %c0_19 = arith.constant 0 : index
    %c0_20 = arith.constant 0 : index
    %20 = vector.load %arg3[%c2_18, %c0_19, %c0_20] : memref<9x4x128xbf16, #tpu.memory_space<vmem>>, vector<1x4x128xbf16>
    %21 = vector.shape_cast %20 : vector<1x4x128xbf16> to vector<4x128xbf16>
    %cst_21 = arith.constant dense<0.000000e+00> : vector<256x128xf32>
    %22 = tpu.matmul %19, %21, %cst_21 {dimension_numbers = #tpu.dot_dimension_numbers<[1], [0], [0], [1], [0, 0, 1, 1], [], []>} : vector<256x4xbf16>, vector<4x128xbf16>, vector<256x128xf32> -> vector<256x128xf32>
    %23 = arith.addf %16, %22 : vector<256x128xf32>
    %c0_22 = arith.constant 0 : index
    %c1_23 = arith.constant 1 : index
    %c0_24 = arith.constant 0 : index
    %c0_25 = arith.constant 0 : index
    %24 = vector.load %arg2[%c0_22, %c1_23, %c0_24, %c0_25] : memref<1x18x18x4xbf16, #tpu.memory_space<vmem>>, vector<1x16x16x4xbf16>
    %25 = vector.shape_cast %24 : vector<1x16x16x4xbf16> to vector<16x16x4xbf16>
    %26 = vector.shape_cast %25 : vector<16x16x4xbf16> to vector<256x4xbf16>
    %c3 = arith.constant 3 : index
    %c0_26 = arith.constant 0 : index
    %c0_27 = arith.constant 0 : index
    %27 = vector.load %arg3[%c3, %c0_26, %c0_27] : memref<9x4x128xbf16, #tpu.memory_space<vmem>>, vector<1x4x128xbf16>
    %28 = vector.shape_cast %27 : vector<1x4x128xbf16> to vector<4x128xbf16>
    %cst_28 = arith.constant dense<0.000000e+00> : vector<256x128xf32>
    %29 = tpu.matmul %26, %28, %cst_28 {dimension_numbers = #tpu.dot_dimension_numbers<[1], [0], [0], [1], [0, 0, 1, 1], [], []>} : vector<256x4xbf16>, vector<4x128xbf16>, vector<256x128xf32> -> vector<256x128xf32>
    %30 = arith.addf %23, %29 : vector<256x128xf32>
    %c0_29 = arith.constant 0 : index
    %c1_30 = arith.constant 1 : index
    %c1_31 = arith.constant 1 : index
    %c0_32 = arith.constant 0 : index
    %31 = vector.load %arg2[%c0_29, %c1_30, %c1_31, %c0_32] : memref<1x18x18x4xbf16, #tpu.memory_space<vmem>>, vector<1x16x16x4xbf16>
    %32 = vector.shape_cast %31 : vector<1x16x16x4xbf16> to vector<16x16x4xbf16>
    %33 = vector.shape_cast %32 : vector<16x16x4xbf16> to vector<256x4xbf16>
    %c4 = arith.constant 4 : index
    %c0_33 = arith.constant 0 : index
    %c0_34 = arith.constant 0 : index
    %34 = vector.load %arg3[%c4, %c0_33, %c0_34] : memref<9x4x128xbf16, #tpu.memory_space<vmem>>, vector<1x4x128xbf16>
    %35 = vector.shape_cast %34 : vector<1x4x128xbf16> to vector<4x128xbf16>
    %cst_35 = arith.constant dense<0.000000e+00> : vector<256x128xf32>
    %36 = tpu.matmul %33, %35, %cst_35 {dimension_numbers = #tpu.dot_dimension_numbers<[1], [0], [0], [1], [0, 0, 1, 1], [], []>} : vector<256x4xbf16>, vector<4x128xbf16>, vector<256x128xf32> -> vector<256x128xf32>
    %37 = arith.addf %30, %36 : vector<256x128xf32>
    %c0_36 = arith.constant 0 : index
    %c1_37 = arith.constant 1 : index
    %c2_38 = arith.constant 2 : index
    %c0_39 = arith.constant 0 : index
    %38 = vector.load %arg2[%c0_36, %c1_37, %c2_38, %c0_39] : memref<1x18x18x4xbf16, #tpu.memory_space<vmem>>, vector<1x16x16x4xbf16>
    %39 = vector.shape_cast %38 : vector<1x16x16x4xbf16> to vector<16x16x4xbf16>
    %40 = vector.shape_cast %39 : vector<16x16x4xbf16> to vector<256x4xbf16>
    %c5 = arith.constant 5 : index
    %c0_40 = arith.constant 0 : index
    %c0_41 = arith.constant 0 : index
    %41 = vector.load %arg3[%c5, %c0_40, %c0_41] : memref<9x4x128xbf16, #tpu.memory_space<vmem>>, vector<1x4x128xbf16>
    %42 = vector.shape_cast %41 : vector<1x4x128xbf16> to vector<4x128xbf16>
    %cst_42 = arith.constant dense<0.000000e+00> : vector<256x128xf32>
    %43 = tpu.matmul %40, %42, %cst_42 {dimension_numbers = #tpu.dot_dimension_numbers<[1], [0], [0], [1], [0, 0, 1, 1], [], []>} : vector<256x4xbf16>, vector<4x128xbf16>, vector<256x128xf32> -> vector<256x128xf32>
    %44 = arith.addf %37, %43 : vector<256x128xf32>
    %c0_43 = arith.constant 0 : index
    %c2_44 = arith.constant 2 : index
    %c0_45 = arith.constant 0 : index
    %c0_46 = arith.constant 0 : index
    %45 = vector.load %arg2[%c0_43, %c2_44, %c0_45, %c0_46] : memref<1x18x18x4xbf16, #tpu.memory_space<vmem>>, vector<1x16x16x4xbf16>
    %46 = vector.shape_cast %45 : vector<1x16x16x4xbf16> to vector<16x16x4xbf16>
    %47 = vector.shape_cast %46 : vector<16x16x4xbf16> to vector<256x4xbf16>
    %c6 = arith.constant 6 : index
    %c0_47 = arith.constant 0 : index
    %c0_48 = arith.constant 0 : index
    %48 = vector.load %arg3[%c6, %c0_47, %c0_48] : memref<9x4x128xbf16, #tpu.memory_space<vmem>>, vector<1x4x128xbf16>
    %49 = vector.shape_cast %48 : vector<1x4x128xbf16> to vector<4x128xbf16>
    %cst_49 = arith.constant dense<0.000000e+00> : vector<256x128xf32>
    %50 = tpu.matmul %47, %49, %cst_49 {dimension_numbers = #tpu.dot_dimension_numbers<[1], [0], [0], [1], [0, 0, 1, 1], [], []>} : vector<256x4xbf16>, vector<4x128xbf16>, vector<256x128xf32> -> vector<256x128xf32>
    %51 = arith.addf %44, %50 : vector<256x128xf32>
    %c0_50 = arith.constant 0 : index
    %c2_51 = arith.constant 2 : index
    %c1_52 = arith.constant 1 : index
    %c0_53 = arith.constant 0 : index
    %52 = vector.load %arg2[%c0_50, %c2_51, %c1_52, %c0_53] : memref<1x18x18x4xbf16, #tpu.memory_space<vmem>>, vector<1x16x16x4xbf16>
    %53 = vector.shape_cast %52 : vector<1x16x16x4xbf16> to vector<16x16x4xbf16>
    %54 = vector.shape_cast %53 : vector<16x16x4xbf16> to vector<256x4xbf16>
    %c7 = arith.constant 7 : index
    %c0_54 = arith.constant 0 : index
    %c0_55 = arith.constant 0 : index
    %55 = vector.load %arg3[%c7, %c0_54, %c0_55] : memref<9x4x128xbf16, #tpu.memory_space<vmem>>, vector<1x4x128xbf16>
    %56 = vector.shape_cast %55 : vector<1x4x128xbf16> to vector<4x128xbf16>
    %cst_56 = arith.constant dense<0.000000e+00> : vector<256x128xf32>
    %57 = tpu.matmul %54, %56, %cst_56 {dimension_numbers = #tpu.dot_dimension_numbers<[1], [0], [0], [1], [0, 0, 1, 1], [], []>} : vector<256x4xbf16>, vector<4x128xbf16>, vector<256x128xf32> -> vector<256x128xf32>
    %58 = arith.addf %51, %57 : vector<256x128xf32>
    %c0_57 = arith.constant 0 : index
    %c2_58 = arith.constant 2 : index
    %c2_59 = arith.constant 2 : index
    %c0_60 = arith.constant 0 : index
    %59 = vector.load %arg2[%c0_57, %c2_58, %c2_59, %c0_60] : memref<1x18x18x4xbf16, #tpu.memory_space<vmem>>, vector<1x16x16x4xbf16>
    %60 = vector.shape_cast %59 : vector<1x16x16x4xbf16> to vector<16x16x4xbf16>
    %61 = vector.shape_cast %60 : vector<16x16x4xbf16> to vector<256x4xbf16>
    %c8 = arith.constant 8 : index
    %c0_61 = arith.constant 0 : index
    %c0_62 = arith.constant 0 : index
    %62 = vector.load %arg3[%c8, %c0_61, %c0_62] : memref<9x4x128xbf16, #tpu.memory_space<vmem>>, vector<1x4x128xbf16>
    %63 = vector.shape_cast %62 : vector<1x4x128xbf16> to vector<4x128xbf16>
    %cst_63 = arith.constant dense<0.000000e+00> : vector<256x128xf32>
    %64 = tpu.matmul %61, %63, %cst_63 {dimension_numbers = #tpu.dot_dimension_numbers<[1], [0], [0], [1], [0, 0, 1, 1], [], []>} : vector<256x4xbf16>, vector<4x128xbf16>, vector<256x128xf32> -> vector<256x128xf32>
    %65 = arith.addf %58, %64 : vector<256x128xf32>
    %c0_64 = arith.constant 0 : index
    %c0_65 = arith.constant 0 : index
    %c0_66 = arith.constant 0 : index
    %66 = vector.load %arg5[%c0_64, %c0_65, %c0_66] : memref<1x256x128xf32, #tpu.memory_space<vmem>>, vector<1x256x128xf32>
    %67 = vector.shape_cast %66 : vector<1x256x128xf32> to vector<256x128xf32>
    %68 = vector.shape_cast %65 : vector<256x128xf32> to vector<1x256x128xf32>
    tpu.vector_store %arg5[%c0_64, %c0_65, %c0_66], %68 {strides = array<i32>} : memref<1x256x128xf32, #tpu.memory_space<vmem>>, vector<1x256x128xf32>,
    return
  }
  func.func @transform_0(%arg0: i32, %arg1: i32) -> (i32, i32, i32, i32) {
    %c0_i32 = arith.constant 0 : i32
    %c0_i32_0 = arith.constant 0 : i32
    %c0_i32_1 = arith.constant 0 : i32
    %c0_i32_2 = arith.constant 0 : i32
    return %arg0, %c0_i32, %c0_i32_0, %c0_i32_1 : i32, i32, i32, i32
  }
  func.func @transform_1(%arg0: i32, %arg1: i32) -> (i32, i32, i32) {
    %c0_i32 = arith.constant 0 : i32
    %c0_i32_0 = arith.constant 0 : i32
    %c0_i32_1 = arith.constant 0 : i32
    return %c0_i32, %c0_i32_0, %arg1 : i32, i32, i32
  }
  func.func @transform_2(%arg0: i32, %arg1: i32) -> (i32, i32) {
    %c0_i32 = arith.constant 0 : i32
    %c0_i32_0 = arith.constant 0 : i32
    return %c0_i32, %arg1 : i32, i32
  }
  func.func @transform_3(%arg0: i32, %arg1: i32) -> (i32, i32, i32) {
    %c0_i32 = arith.constant 0 : i32
    %c0_i32_0 = arith.constant 0 : i32
    return %arg0, %c0_i32, %arg1 : i32, i32, i32
  }
}

</mosaic_0001>

<bundles_post_ra>
// kernel: tpu_custom_call.1
= control target key start
LH: loop header
LB: loop body
LE: loop exit
PB: predicated region body
PF: predicated region fallthrough
CT: control target
= control target key end

     0   :  { %8 = vsyncpa [#allocation3], 0  ;;  %s8326_s0 = inlined_call_operand.vmem [shape: bf16[2,18,18,4], index: 0, kind: input, shape index: {}]   ;;  %s8327_s1 = inlined_call_operand.vmem [shape: bf16[9,4,128], index: 1, kind: input, shape index: {}]   ;;  %s8328_s2 = inlined_call_operand.vmem [shape: f32[1,128], index: 2, kind: input, shape index: {}]   ;;  %s8329_s3 = inlined_call_operand.hbm [shape: f32[2,256,128], index: 3, kind: output, shape index: {}]  }
   0x1   :  { %10 = vsyncpa [#allocation3 + $0x1], 0  ;;  %s6575_s12 = smov 0   ;;  %s6577_s13 = smov 0  }
   0x2   :  { %s6579_s14 = smov 0   ;;  %s6581_s15 = smov 0  }
   0x3   :  { %s6583_s16 = smov 0   ;;  %s6585_s17 = smov 0  }
   0x4 LB: > { %s5039_s18 = sadd.s32 4294967295, %s6550_s17   ;;  %s5040_s19 = sadd.s32 4294967294, %s6550_s17   ;;  %s6550_s17 = sphi %s6585_s17, %s16_s17   ;;  %s6546_s16 = sphi %s6583_s16, %s8342_s16   ;;  %s6542_s15 = sphi %s6581_s15, %s8341_s15   ;;  %s6538_s14 = sphi %s6579_s14, %s8340_s14   ;;  %s6534_s13 = sphi %s6577_s13, %s8339_s13   ;;  %s6530_s12 = sphi %s6575_s12, %s8338_s12  }
   0x5   : > { %s28_s20 = sadd.s32 1, %s6546_s16  ;;  %s115_s21 = sadd.s32 1, %s6538_s14 }
   0x6   : > { %p30_p0 = scmp.ge.s32.totalorder %s28_s20, 2  ;;  %p125_p1 = scmp.ne.s32.totalorder %s6538_s14, %s6534_s13 }
   0x7   : > { %p126_p2 = scmp.eq.s32.totalorder %s5039_s18, 1  ;;  %p131_p3 = scmp.ne.s32.totalorder %s6534_s13, %s6530_s12 }
   0x8   : > { %s8344_s20 = smov (%p30_p0, %s28_s20), 0  ;;  %p132_p5 = scmp.eq.s32.totalorder %s5040_s19, 1 }
   0x9   : > { %p6615_p4 = por %p126_p2, %p125_p1  ;;  %s110_s23 = ssub.s32 %s6546_s16, %s8344_s20 }
   0xa   : > { %p5045_p6 = scmp.ge.s32.totalorder %s6550_s17, 1  ;;  %p113_p7 = scmp.eq.s32.totalorder %s110_s23, 0 }
   0xb   : > { %p6622_p8 = por %p132_p5, %p131_p3  ;;  %p171_p9 = scmp.lt.s32.totalorder %s6550_s17, 3 }
   0xc   : > { %s6628_s25 = scalar_select %p113_p7, %s6538_s14, %s115_s21  }
   0xd   : > { %p172_p10 = pnand %p5045_p6, %p171_p9 }
   0xe   : > { %v254_v0 = vld [vmem:[%s8327_s1] sm:$0x3] (!%p172_p10)  ;;  %vm384_vm0 = vcmask (!%p172_p10), 1041408   ;;  %p202_p11 = scmp.lt.s32.totalorder (!%p172_p10), %s6542_s15, 1  ;;  %v5276_v2 = vld [vmem:[%s8327_s1 + $0x8] sm:$0x3] (!%p172_p10) }
   0xf   : > { %175 = sbr.rel (%p172_p10) target bundleno = 562 (0x232), region = 32  ;;  %6340 = vmatprep.subr.msk.bf16.mxu1 (!%p172_p10), %vm384_vm0, %v254_v0  ;;  %v386_v1 = vsel (!%p172_p10), %vm384_vm0, %v254_v0, 0  ;;  %v5081_v3 = vld [vmem:[%s8327_s1 + $0x2] sm:$0x3] (!%p172_p10)  ;;  %6344 = vmatprep.subr.msk.bf16.mxu0 (!%p172_p10), %vm384_vm0, %v5276_v2  ;;  %v6645_v4 = vsel (!%p172_p10), %vm384_vm0, %v5276_v2, 0  ;;  %vm335_vm1 = vcmask (!%p172_p10), 31744  }
  0x10   : > { %5745 = vmatpush3.bf16.msra.mxu1 (!%p172_p10), %v386_v1  ;;  %5881 = vmatpush3.bf16.msra.mxu0 (!%p172_p10), %v6645_v4  ;;  %v5341_v5 = vld [vmem:[%s8327_s1 + $0xa] sm:$0x3] (!%p172_p10)  ;;  %vm629_vm2 = vsmask.f32 (!%p172_p10), 3328  ;;  %vm630_vm3 = vsmask.f32 (!%p172_p10), 7440 }
  0x11   : > { %6341 = vmatprep.subr.msk.bf16.mxu1 (!%p172_p10), %vm384_vm0, %v5081_v3  ;;  %6346 = vmatprep.subr.msk.bf16.mxu0 (!%p172_p10), %vm384_vm0, %v5341_v5  ;;  %v6661_v6 = vld [vmem:[%s8327_s1 + $0xc] sm:$0x3] (!%p172_p10)  ;;  %v5130_v8 = vld [vmem:[%s8327_s1 + $0x4] sm:$0x3] (!%p172_p10)  ;;  %v1115_v10 = vsel (!%p172_p10), %vm384_vm0, %v5081_v3, 0  ;;  %v6673_v12 = vsel (!%p172_p10), %vm384_vm0, %v5341_v5, 0  ;;  %vm6713_vm4 = vmor (!%p172_p10), %vm629_vm2, %vm630_vm3 }
  0x12   : > { %v6677_v13 = vsel (!%p172_p10), %vm384_vm0, %v6661_v6, 0  ;;  %v6694_v22 = vld [vmem:[%s8327_s1 + $0xe] sm:$0x3] (!%p172_p10)  ;;  %v6702_v27 = vsel (!%p172_p10), %vm384_vm0, %v5130_v8, 0  ;;  %vm1374_vm5 = vcmask (!%p172_p10), 1042432   ;;  %vm1375_vm6 = vcmask (!%p172_p10), 1046532  }
  0x13   : > { %v6720_v46 = vsel (!%p172_p10), %vm384_vm0, %v6694_v22, 0  ;;  %vm6840_vm7 = vmor (!%p172_p10), %vm1374_vm5, %vm1375_vm6  ;;  %s199_s7 = sand.u32 (!%p172_p10), 1, %s6534_s13   ;;  %s5590_s18 = sshll.u32 (!%p172_p10), %s6542_s15, 12 }
  0x14   : > { %s5046_s10 = sshll.u32 (!%p172_p10), %s199_s7, 8  ;;  %s8271_s26 = scalar_lea.hbm (!%p172_p10), %s8329_s3, %s5590_s18 }
  0x15   : > { %s6552_s28 = smov (!%p172_p10), [#allocation2]  }
  0x16   : > { %s203_s5 = scalar_select %p202_p11, %s6542_s15, 1 }
  0x17   : > { %s8280_s15 = scalar_lea.sflag [#allocation3], %s199_s7  ;;  %s6476_s29 = sshll.u32 %s6552_s28, 4  ;;  %s6477_s29 = int_to_ptr.vmem [resolvable:$false] %s6476_s29 }
  0x18   : > { %s6350_s8 = smul.u32 216, %s203_s5  ;;  %s6478_s30 = scalar_lea.vmem %s6477_s29, 8192 }
  0x1a   : > { %s6656_s11 = scalar_lea.vmem %s8326_s0, %s6350_s8 }
  0x1b   : > { %v6408_v7 = vld [vmem:[%s6656_s11] sm:$0xff]   ;;  %v6409_v9 = vld [vmem:[%s6656_s11 + $0xc] sm:$0xff]   ;;  %v6410_v11 = vld [vmem:[%s6656_s11 + $0x18] sm:$0xff]  }
  0x1c   : > { %5746 = vmatprep.mubr.msk.bf16.mxu1 %vm335_vm1, %v6408_v7  ;;  %v5228_v14 = vld [vmem:[%s6656_s11 + $0xc] sm:$0xf]  ;;  %v6682_v15 = vld [vmem:[%s6656_s11 + $0x10] sm:$0xf]  ;;  %v6685_v16 = vld [vmem:[%s6656_s11 + $0x14] sm:$0x1] }
  0x1d   : > { %5747 = vmatmul.mubr.msk.bf16.vlgmr.msra.gmra.mrb[0].mxu1 %vm335_vm1, %v6409_v9  ;;  %v2191_v17 = vshrl.u32 %v5228_v14, 16  ;;  %v2194_v18 = vshll.u32 %v5228_v14, 16  ;;  %v2200_v19 = vshll.u32 %v6682_v15, 16  ;;  %v2204_v20 = vshrl.u32 %v6682_v15, 16  ;;  %v5231_v21 = vld [vmem:[%s6656_s11 + $0x18] sm:$0xf] }
  0x1e   : > { %5750 = vmatprep.mubr.msk.bf16.mxu1 %vm335_vm1, %v6410_v11  ;;  %5779 = vmatpush3.bf16.msra.mxu1 %v1115_v10  ;;  %v6411_v23 = vld [vmem:[%s6656_s11 + $0x24] sm:$0xff]   ;;  %v2210_v24 = vshll.u32 %v6685_v16, 16  ;;  %v6699_v25 = vld [vmem:[%s6656_s11 + $0x1c] sm:$0xf]  ;;  %v2215_v26 = vshrl.u32 %v5231_v21, 16  ;;  %v2218_v35 = vshll.u32 %v5231_v21, 16 }
  0x1f   : > { %6342 = vmatprep.subr.msk.bf16.mxu1 %vm384_vm0, %v5130_v8  ;;  %v2193_v28 = vrot.slane %v2191_v17, 4  ;;  %v2196_v29 = vrot.slane %v2194_v18, 5  ;;  %v2202_v30 = vrot.slane %v2200_v19, 5  ;;  %v2206_v31 = vrot.slane %v2204_v20, 4  ;;  %v6705_v32 = vld [vmem:[%s6656_s11 + $0x20] sm:$0x1] }
  0x20   : > { %v2212_v33 = vrot.slane %v2210_v24, 5  ;;  %v2217_v34 = vrot.slane %v2215_v26, 4  ;;  %v2224_v36 = vshll.u32 %v6699_v25, 16  ;;  %v2228_v39 = vshrl.u32 %v6699_v25, 16  ;;  %v6412_v41 = vld [vmem:[%s6656_s11 + $0x30] sm:$0xff]   ;;  %v6413_v0 = vld [vmem:[%s6656_s11 + $0x3c] sm:$0xff]  }
  0x21   : > { %v2197_v37 = vor.u32 %v2196_v29, %v2193_v28  ;;  %v2207_v38 = vor.u32 %v2206_v31, %v2202_v30  ;;  %v2234_v40 = vshll.u32 %v6705_v32, 16  ;;  %v2934_v43 = vrot.slane %v6682_v15, 5  ;;  %v5234_v54 = vld [vmem:[%s6656_s11 + $0x24] sm:$0xf]  ;;  %v6728_v55 = vld [vmem:[%s6656_s11 + $0x28] sm:$0xf] }
  0x22   : > { %v2220_v44 = vrot.slane %v2218_v35, 5  ;;  %v2226_v45 = vrot.slane %v2224_v36, 5  ;;  %v2937_v49 = vrot.slane %v6685_v16, 5  ;;  %v2230_v50 = vrot.slane %v2228_v39, 4  ;;  %v6735_v59 = vld [vmem:[%s6656_s11 + $0x2c] sm:$0x1] }
  0x23   : > { %v2198_v47 = vrot.slane %v2197_v37, 4  ;;  %v2208_v48 = vrot.slane %v2207_v38, 4  ;;  %v2236_v52 = vrot.slane %v2234_v40, 5  ;;  %v2941_v53 = vrot.slane %v6699_v25, 5  ;;  %v5237_v61 = vld [vmem:[%s6656_s11 + $0x30] sm:$0xf] }
  0x24   : > { %v2221_v51 = vor.u32 %v2220_v44, %v2217_v34  ;;  %v2231_v58 = vor.u32 %v2230_v50, %v2226_v45  ;;  %v2239_v60 = vshrl.u32 %v5234_v54, 16  ;;  %v2242_v1 = vshll.u32 %v5234_v54, 16  ;;  %v6741_v3 = vld [vmem:[%s6656_s11 + $0x34] sm:$0xf]  ;;  %v6746_v10 = vld [vmem:[%s6656_s11 + $0x38] sm:$0x1] }
  0x25   : > { %5751 = vmatmul.mubr.msk.bf16.gmra.mrb[4].mxu1 %vm335_vm1, %v6411_v23  ;;  %v2203_v56 = vsel %vm6713_vm4, %v2198_v47, %v2202_v30  ;;  %v2213_v57 = vsel %vm6713_vm4, %v2208_v48, %v2212_v33  ;;  %v2248_v2 = vshll.u32 %v6728_v55, 16  ;;  %v2252_v8 = vshrl.u32 %v6728_v55, 16  ;;  %v6414_v19 = vld [vmem:[%s6656_s11 + $0x48] sm:$0xff]   ;;  %v5240_v36 = vld [vmem:[%s6656_s11 + $0x3c] sm:$0xf] }
  0x26   : > { %5754 = vmatprep.mubr.msk.bf16.mxu1 %vm335_vm1, %v6412_v41  ;;  %v5277_v62 = vcombine.low %v2203_v56, %v2213_v57  ;;  %v2222_v63 = vrot.slane %v2221_v51, 4  ;;  %v2232_v5 = vrot.slane %v2231_v58, 4  ;;  %v2241_v7 = vrot.slane %v2239_v60, 4  ;;  %v6767_v41 = vld [vmem:[%s6656_s11 + $0x40] sm:$0xf] }
  0x27   : > { %v2258_v9 = vshll.u32 %v6735_v59, 16  ;;  %v2244_v14 = vrot.slane %v2242_v1, 5  ;;  %v2250_v17 = vrot.slane %v2248_v2, 5  ;;  %v2263_v18 = vshrl.u32 %v5237_v61, 16  ;;  %v6771_v50 = vld [vmem:[%s6656_s11 + $0x44] sm:$0x1] }
  0x28   : > { %5882 = vmatprep.mubr.msk.bf16.mxu0 %vm335_vm1, %v5277_v62  ;;  %v2227_v11 = vsel %vm6713_vm4, %v2222_v63, %v2226_v45  ;;  %v2237_v20 = vsel %vm6713_vm4, %v2232_v5, %v2236_v52  ;;  %v2254_v21 = vrot.slane %v2252_v8, 4  ;;  %v2266_v24 = vshll.u32 %v5237_v61, 16  ;;  %v6415_v52 = vld [vmem:[%s6656_s11 + $0x54] sm:$0xff]   ;;  %v5243_v58 = vld [vmem:[%s6656_s11 + $0x48] sm:$0xf]  ;;  %v6416_v8 = vld [vmem:[%s6656_s11 + $0x60] sm:$0xff]  }
  0x29   : > { %v2260_v23 = vrot.slane %v2258_v9, 5  ;;  %v5278_v26 = vcombine.low %v2227_v11, %v2237_v20  ;;  %v2245_v28 = vor.u32 %v2244_v14, %v2241_v7  ;;  %v2265_v29 = vrot.slane %v2263_v18, 4  ;;  %v6784_v63 = vld [vmem:[%s6656_s11 + $0x4c] sm:$0xf]  ;;  %v6787_v7 = vld [vmem:[%s6656_s11 + $0x50] sm:$0x1] }
  0x2a   : > { %v2272_v30 = vshll.u32 %v6741_v3, 16  ;;  %v2255_v31 = vor.u32 %v2254_v21, %v2250_v17  ;;  %v2268_v33 = vrot.slane %v2266_v24, 5  ;;  %v2276_v34 = vshrl.u32 %v6741_v3, 16 }
  0x2b   : > { %v2282_v35 = vshll.u32 %v6746_v10, 16  ;;  %5883 = vmatmul.mubr.msk.bf16.vlgmr.msra.gmra.mrb[0].mxu0 %vm335_vm1, %v5278_v26  ;;  %v6762_v37 = vrot.slane %v2941_v53, 4  ;;  %v2944_v38 = vrot.slane %v6705_v32, 5  ;;  %v2246_v39 = vrot.slane %v2245_v28, 4  ;;  %v5246_v28 = vld [vmem:[%s6656_s11 + $0x54] sm:$0xf] }
  0x2c   : > { %v2274_v40 = vrot.slane %v2272_v30, 5  ;;  %5915 = vmatpush3.bf16.msra.mxu0 %v6673_v12  ;;  %v2256_v44 = vrot.slane %v2255_v31, 4  ;;  %v2269_v45 = vor.u32 %v2268_v33, %v2265_v29  ;;  %v2278_v47 = vrot.slane %v2276_v34, 4  ;;  %v6802_v34 = vld [vmem:[%s6656_s11 + $0x58] sm:$0xf] }
  0x2d   : > { %5755 = vmatmul.mubr.msk.bf16.gmra.mrb[8].mxu1 %vm335_vm1, %v6413_v0  ;;  %v2284_v48 = vrot.slane %v2282_v35, 5  ;;  %v2251_v51 = vsel %vm6713_vm4, %v2246_v39, %v2250_v17  ;;  %v2287_v54 = vshrl.u32 %v5240_v36, 16  ;;  %v2290_v56 = vshll.u32 %v5240_v36, 16  ;;  %6347 = vmatprep.subr.msk.bf16.mxu0 %vm384_vm0, %v6661_v6 }
  0x2e   : > { %5758 = vmatprep.mubr.msk.bf16.mxu1 %vm335_vm1, %v6414_v19  ;;  %v2296_v57 = vshll.u32 %v6767_v41, 16  ;;  %v2261_v12 = vsel %vm6713_vm4, %v2256_v44, %v2260_v23  ;;  %v2270_v60 = vrot.slane %v2269_v45, 4  ;;  %v2279_v61 = vor.u32 %v2278_v47, %v2274_v40  ;;  %v6417_v44 = vld [vmem:[%s6656_s11 + $0x6c] sm:$0xff]   ;;  %v6807_v45 = vld [vmem:[%s6656_s11 + $0x5c] sm:$0x1] }
  0x2f   : > { %v2300_v62 = vshrl.u32 %v6767_v41, 16  ;;  %v5279_v0 = vcombine.low %v2251_v51, %v2261_v12  ;;  %v2289_v1 = vrot.slane %v2287_v54, 4  ;;  %v2292_v2 = vrot.slane %v2290_v56, 5  ;;  %v5249_v54 = vld [vmem:[%s6656_s11 + $0x60] sm:$0xf] }
  0x30   : > { %v2298_v5 = vrot.slane %v2296_v57, 5  ;;  %v2275_v9 = vsel %vm6713_vm4, %v2270_v60, %v2274_v40  ;;  %v2280_v6 = vrot.slane %v2279_v61, 4  ;;  %v2306_v14 = vshll.u32 %v6771_v50, 16  ;;  %v6814_v56 = vld [vmem:[%s6656_s11 + $0x64] sm:$0xf] }
  0x31   : > { %v2302_v11 = vrot.slane %v2300_v62, 4  ;;  %5886 = vmatprep.mubr.msk.bf16.mxu0 %vm335_vm1, %v5279_v0  ;;  %v2293_v17 = vor.u32 %v2292_v2, %v2289_v1  ;;  %v2311_v18 = vshrl.u32 %v5243_v58, 16  ;;  %v2314_v19 = vshll.u32 %v5243_v58, 16  ;;  %v6820_v2 = vld [vmem:[%s6656_s11 + $0x68] sm:$0x1] }
  0x32   : > { %v2320_v20 = vshll.u32 %v6784_v63, 16  ;;  %v2285_v21 = vsel %vm6713_vm4, %v2280_v6, %v2284_v48  ;;  %v2308_v24 = vrot.slane %v2306_v14, 5  ;;  %v2324_v26 = vshrl.u32 %v6784_v63, 16 }
  0x33   : > { %v2303_v23 = vor.u32 %v2302_v11, %v2298_v5  ;;  %v5280_v29 = vcombine.low %v2275_v9, %v2285_v21  ;;  %v2294_v30 = vrot.slane %v2293_v17, 4  ;;  %v2313_v31 = vrot.slane %v2311_v18, 4  ;;  %v5310_v21 = vld [vmem:[%s6656_s11 + $0x18] sm:$0xe] }
  0x34   : > { %v2316_v33 = vrot.slane %v2314_v19, 5  ;;  %v2322_v36 = vrot.slane %v2320_v20, 5  ;;  %v2326_v39 = vrot.slane %v2324_v26, 4  ;;  %v2330_v40 = vshll.u32 %v6787_v7, 16  ;;  %v5309_v20 = vld [vmem:[%s6656_s11 + $0xc] sm:$0xe] }
  0x35   : > { %5759 = vmatmul.mubr.msk.bf16.gmra.mrb[12].mxu1 %vm335_vm1, %v6415_v52  ;;  %v2304_v35 = vrot.slane %v2303_v23, 4  ;;  %5887 = vmatmul.mubr.msk.bf16.gmra.mrb[4].mxu0 %vm335_vm1, %v5280_v29  ;;  %v2299_v47 = vsel %vm6713_vm4, %v2294_v30, %v2298_v5  ;;  %v2335_v51 = vshrl.u32 %v5246_v28, 16  ;;  %v2338_v52 = vshll.u32 %v5246_v28, 16  ;;  %v6418_v5 = vld [vmem:[%s6656_s11 + $0x78] sm:$0xff]  }
  0x36   : > { %5762 = vmatprep.mubr.msk.bf16.mxu1 %vm335_vm1, %v6416_v8  ;;  %v2317_v48 = vor.u32 %v2316_v33, %v2313_v31  ;;  %v2327_v58 = vor.u32 %v2326_v39, %v2322_v36  ;;  %v2332_v12 = vrot.slane %v2330_v40, 5  ;;  %v2344_v60 = vshll.u32 %v6802_v34, 16 }
  0x37   : > { %v2309_v57 = vsel %vm6713_vm4, %v2304_v35, %v2308_v24  ;;  %v2337_v0 = vrot.slane %v2335_v51, 4  ;;  %v2340_v1 = vrot.slane %v2338_v52, 5  ;;  %v2348_v6 = vshrl.u32 %v6802_v34, 16 }
  0x38   : > { %v5281_v61 = vcombine.low %v2299_v47, %v2309_v57  ;;  %v2318_v62 = vrot.slane %v2317_v48, 4  ;;  %v2328_v8 = vrot.slane %v2327_v58, 4  ;;  %v2346_v9 = vrot.slane %v2344_v60, 5  ;;  %v6420_v57 = vld [vmem:[%s6656_s11 + $0x90] sm:$0xff]   ;;  %v5311_v58 = vld [vmem:[%s6656_s11 + $0x24] sm:$0xe] }
  0x39   : > { %v2354_v11 = vshll.u32 %v6807_v45, 16  ;;  %v2341_v17 = vor.u32 %v2340_v1, %v2337_v0  ;;  %v2359_v18 = vshrl.u32 %v5249_v54, 16  ;;  %v2362_v19 = vshll.u32 %v5249_v54, 16  ;;  %v5312_v0 = vld [vmem:[%s6656_s11 + $0x30] sm:$0xe] }
  0x3a   : > { %5890 = vmatprep.mubr.msk.bf16.mxu0 %vm335_vm1, %v5281_v61  ;;  %v2323_v14 = vsel %vm6713_vm4, %v2318_v62, %v2322_v36  ;;  %v2333_v23 = vsel %vm6713_vm4, %v2328_v8, %v2332_v12  ;;  %v2350_v24 = vrot.slane %v2348_v6, 4  ;;  %v2368_v28 = vshll.u32 %v6814_v56, 16 }
  0x3b   : > { %v2356_v26 = vrot.slane %v2354_v11, 5  ;;  %v5282_v29 = vcombine.low %v2323_v14, %v2333_v23  ;;  %v2342_v30 = vrot.slane %v2341_v17, 4  ;;  %v2361_v31 = vrot.slane %v2359_v18, 4  ;;  %v5313_v14 = vld [vmem:[%s6656_s11 + $0x3c] sm:$0xe] }
  0x3c   : > { %v2364_v33 = vrot.slane %v2362_v19, 5  ;;  %v2351_v35 = vor.u32 %v2350_v24, %v2346_v9  ;;  %v2370_v36 = vrot.slane %v2368_v28, 5  ;;  %v2372_v39 = vshrl.u32 %v6814_v56, 16  ;;  %v581_v24 = vld [vmem:[%s6656_s11] sm:$0xf] }
  0x3d   : > { %5763 = vmatmul.mubr.msk.bf16.gmra.mrb[16].mxu1 %vm335_vm1, %v6417_v44  ;;  %v2378_v40 = vshll.u32 %v6820_v2, 16  ;;  %v6419_v44 = vld [vmem:[%s6656_s11 + $0x84] sm:$0xff]   ;;  %5891 = vmatmul.mubr.msk.bf16.gmra.mrb[8].mxu0 %vm335_vm1, %v5282_v29  ;;  %v2347_v48 = vsel %vm6713_vm4, %v2342_v30, %v2346_v9  ;;  %v5325_v52 = vrot.slane %v5309_v20, 9  ;;  %v2936_v54 = vrot.slane %v2934_v43, 4 }
  0x3e   : > { %5766 = vmatprep.mubr.msk.bf16.mxu1 %vm335_vm1, %v6418_v5  ;;  %v2365_v51 = vor.u32 %v2364_v33, %v2361_v31  ;;  %v2352_v12 = vrot.slane %v2351_v35, 4  ;;  %v2374_v60 = vrot.slane %v2372_v39, 4  ;;  %v5326_v62 = vrot.slane %v5310_v21, 9  ;;  %v5314_v20 = vld [vmem:[%s6656_s11 + $0x48] sm:$0xe]  ;;  %v6421_v31 = vld [vmem:[%s6656_s11 + $0x9c] sm:$0xff]  }
  0x3f   : > { %v2380_v61 = vrot.slane %v2378_v40, 5  ;;  %v6857_v5 = vsel %vm6840_vm7, %v6762_v37, %v2944_v38  ;;  %v5327_v8 = vrot.slane %v5311_v58, 9  ;;  %v2935_v11 = vsel %vm6840_vm7, %v5325_v52, %v2934_v43  ;;  %v582_v30 = vld [vmem:[%s6656_s11 + $0x4] sm:$0xf]  ;;  %v6422_v35 = vld [vmem:[%s6656_s11 + $0xa8] sm:$0xff]  }
  0x40   : > { %v2366_v1 = vrot.slane %v2365_v51, 4  ;;  %v2357_v9 = vsel %vm6713_vm4, %v2352_v12, %v2356_v26  ;;  %v2375_v6 = vor.u32 %v2374_v60, %v2370_v36  ;;  %v2938_v32 = vsel %vm6840_vm7, %v2936_v54, %v2937_v49  ;;  %v584_v52 = vld [vmem:[%s6656_s11 + $0xc] sm:$0xf]  ;;  %v6927_v60 = vld [vmem:[%s6656_s11 + $0x10] sm:$0xf] }
  0x41   : > { %v5283_v17 = vcombine.low %v2347_v48, %v2357_v9  ;;  %v6876_v38 = vsel %vm6840_vm7, %v5326_v62, %v2941_v53  ;;  %v2948_v15 = vrot.slane %v6728_v55, 5  ;;  %v2951_v16 = vrot.slane %v6735_v59, 5  ;;  %v6918_v48 = vld [vmem:[%s6656_s11 + $0x8] sm:$0x1] }
  0x42   : > { %v2371_v37 = vsel %vm6713_vm4, %v2366_v1, %v2370_v36  ;;  %v2376_v43 = vrot.slane %v2375_v6, 4  ;;  %v5328_v49 = vrot.slane %v5312_v0, 9  ;;  %v2955_v18 = vrot.slane %v6741_v3, 5 }
  0x43   : > { %5894 = vmatprep.mubr.msk.bf16.mxu0 %vm335_vm1, %v5283_v17  ;;  %v5342_v19 = vcombine.low %v2935_v11, %v2938_v32  ;;  %v2950_v25 = vrot.slane %v2948_v15, 4  ;;  %v2958_v53 = vrot.slane %v6746_v10, 5  ;;  %v5329_v55 = vrot.slane %v5313_v14, 9  ;;  %v6938_v11 = vld [vmem:[%s6656_s11 + $0x14] sm:$0x1] }
  0x44   : > { %v2381_v21 = vsel %vm6713_vm4, %v2376_v43, %v2380_v61  ;;  %v6890_v59 = vsel %vm6840_vm7, %v5327_v8, %v2948_v15  ;;  %v2957_v3 = vrot.slane %v2955_v18, 4  ;;  %v2962_v23 = vrot.slane %v6767_v41, 5  ;;  %v5315_v43 = vld [vmem:[%s6656_s11 + $0x54] sm:$0xe] }
  0x45   : > { %5767 = vmatmul.mubr.msk.bf16.gmra.mrb[20].mxu1 %vm335_vm1, %v6419_v44  ;;  %v5284_v26 = vcombine.low %v2371_v37, %v2381_v21  ;;  %v5343_v28 = vcombine.low %v6876_v38, %v6857_v5  ;;  %v2952_v10 = vsel %vm6840_vm7, %v2950_v25, %v2951_v16  ;;  %v2965_v29 = vrot.slane %v6771_v50, 5  ;;  %v6423_v25 = vld [vmem:[%s6656_s11 + $0xb4] sm:$0xff]  }
  0x46   : > { %5770 = vmatprep.mubr.msk.bf16.mxu1 %vm335_vm1, %v6420_v57  ;;  %v6903_v33 = vsel %vm6840_vm7, %v5328_v49, %v2955_v18  ;;  %v6907_v41 = vsel %vm6840_vm7, %v2957_v3, %v2958_v53  ;;  %v2964_v36 = vrot.slane %v2962_v23, 4  ;;  %v5330_v39 = vrot.slane %v5314_v20, 9 }
  0x47   : > { %5895 = vmatmul.mubr.msk.bf16.gmra.mrb[12].mxu0 %vm335_vm1, %v5284_v26  ;;  %v5344_v40 = vcombine.low %v6890_v59, %v2952_v10  ;;  %v6914_v50 = vsel %vm6840_vm7, %v5329_v55, %v2962_v23  ;;  %v2969_v44 = vrot.slane %v6784_v63, 5  ;;  %v633_v51 = vshrl.u32 %v581_v24, 16  ;;  %v5316_v59 = vld [vmem:[%s6656_s11 + $0x60] sm:$0xe]  ;;  %v587_v10 = vld [vmem:[%s6656_s11 + $0x18] sm:$0xf] }
  0x48   : > { %5916 = vmatprep.mubr.msk.bf16.mxu0 %vm335_vm1, %v5342_v19  ;;  %v6924_v54 = vsel %vm6840_vm7, %v2964_v36, %v2965_v29  ;;  %v636_v57 = vshll.u32 %v581_v24, 16  ;;  %v642_v58 = vshll.u32 %v582_v30, 16  ;;  %v646_v12 = vshrl.u32 %v582_v30, 16 }
  0x49   : > { %v5345_v61 = vcombine.low %v6903_v33, %v6907_v41  ;;  %v2971_v63 = vrot.slane %v2969_v44, 4  ;;  %v2972_v62 = vrot.slane %v6787_v7, 5  ;;  %v635_v0 = vrot.slane %v633_v51, 4  ;;  %v5253_v41 = vld [vmem:[%s6656_s11 + $0x70] sm:$0xf] }
  0x4a   : > { %v638_v1 = vrot.slane %v636_v57, 5  ;;  %v644_v5 = vrot.slane %v642_v58, 5  ;;  %v648_v8 = vrot.slane %v646_v12, 4  ;;  %v652_v9 = vshll.u32 %v6918_v48, 16  ;;  %v6977_v58 = vld [vmem:[%s6656_s11 + $0x20] sm:$0x1] }
  0x4b   : > { %v5346_v6 = vcombine.low %v6914_v50, %v6924_v54  ;;  %v657_v32 = vshrl.u32 %v584_v52, 16  ;;  %v660_v14 = vshll.u32 %v584_v52, 16  ;;  %v666_v7 = vshll.u32 %v6927_v60, 16 }
  0x4c   : > { %v6943_v17 = vsel %vm6840_vm7, %v5330_v39, %v2969_v44  ;;  %v639_v37 = vor.u32 %v638_v1, %v635_v0  ;;  %v649_v38 = vor.u32 %v648_v8, %v644_v5  ;;  %v654_v15 = vrot.slane %v652_v9, 5  ;;  %v590_v1 = vld [vmem:[%s6656_s11 + $0x24] sm:$0xf] }
  0x4d   : > { %5771 = vmatmul.mubr.msk.bf16.gmra.mrb[24].mxu1 %vm335_vm1, %v6421_v31  ;;  %v659_v16 = vrot.slane %v657_v32, 4  ;;  %v662_v49 = vrot.slane %v660_v14, 5  ;;  %v668_v18 = vrot.slane %v666_v7, 5  ;;  %v670_v19 = vshrl.u32 %v6927_v60, 16  ;;  %v6997_v14 = vld [vmem:[%s6656_s11 + $0x28] sm:$0xf] }
  0x4e   : > { %5774 = vmatprep.mubr.msk.bf16.mxu1 %vm335_vm1, %v6422_v35  ;;  %v6950_v53 = vsel %vm6840_vm7, %v2971_v63, %v2972_v62  ;;  %v640_v55 = vrot.slane %v639_v37, 4  ;;  %v650_v20 = vrot.slane %v649_v38, 4  ;;  %v676_v21 = vshll.u32 %v6938_v11, 16  ;;  %v6965_v35 = vld [vmem:[%s6656_s11 + $0x1c] sm:$0xf] }
  0x4f   : > { %5917 = vmatmul.mubr.msk.bf16.vlgmr.msra.gmra.mrb[0].mxu0 %vm335_vm1, %v5343_v28  ;;  %v663_v3 = vor.u32 %v662_v49, %v659_v16  ;;  %v672_v23 = vrot.slane %v670_v19, 4  ;;  %v5331_v24 = vrot.slane %v5315_v43, 9  ;;  %v2976_v26 = vrot.slane %v6802_v34, 5  ;;  %v5317_v19 = vld [vmem:[%s6656_s11 + $0x6c] sm:$0xe] }
  0x50   : > { %5949 = vmatpush3.bf16.msra.mxu0 %v6677_v13  ;;  %5920 = vmatprep.mubr.msk.bf16.mxu0 %vm335_vm1, %v5344_v40  ;;  %v645_v29 = vsel %vm6713_vm4, %v640_v55, %v644_v5  ;;  %v655_v30 = vsel %vm6713_vm4, %v650_v20, %v654_v15  ;;  %v678_v31 = vrot.slane %v676_v21, 5  ;;  %v2979_v28 = vrot.slane %v6807_v45, 5  ;;  %v7002_v15 = vld [vmem:[%s6656_s11 + $0x2c] sm:$0x1] }
  0x51   : > { %v5082_v36 = vcombine.low %v645_v29, %v655_v30  ;;  %v664_v39 = vrot.slane %v663_v3, 4  ;;  %v673_v34 = vor.u32 %v672_v23, %v668_v18  ;;  %v5332_v44 = vrot.slane %v5316_v59, 9  ;;  %6348 = vmatprep.subr.msk.bf16.mxu0 %vm384_vm0, %v6694_v22  ;;  %v5254_v23 = vld [vmem:[%s6656_s11 + $0x74] sm:$0x1] }
  0x52   : > { %v5347_v13 = vcombine.low %v6943_v17, %v6950_v53  ;;  %v2978_v40 = vrot.slane %v2976_v26, 4  ;;  %v2983_v51 = vrot.slane %v6814_v56, 5  ;;  %v681_v52 = vshrl.u32 %v587_v10, 16 }
  0x53   : > { %v669_v45 = vsel %vm6713_vm4, %v664_v39, %v668_v18  ;;  %v674_v57 = vrot.slane %v673_v34, 4  ;;  %v684_v22 = vshll.u32 %v587_v10, 16  ;;  %v690_v12 = vshll.u32 %v6965_v35, 16 }
  0x54   : > { %v6982_v63 = vsel %vm6840_vm7, %v5331_v24, %v2976_v26  ;;  %v6986_v56 = vsel %vm6840_vm7, %v2978_v40, %v2979_v28  ;;  %v2986_v62 = vrot.slane %v6820_v2, 5  ;;  %v683_v0 = vrot.slane %v681_v52, 4 }
  0x55   : > { %5775 = vmatmul.mubr.msk.bf16.gmra.mrb[28].mxu1 %vm335_vm1, %v6423_v25  ;;  %v679_v5 = vsel %vm6713_vm4, %v674_v57, %v678_v31  ;;  %v6994_v8 = vsel %vm6840_vm7, %v5332_v44, %v2983_v51  ;;  %v2985_v9 = vrot.slane %v2983_v51, 4  ;;  %v686_v32 = vrot.slane %v684_v22, 5  ;;  %v5256_v31 = vld [vmem:[%s6656_s11 + $0x7c] sm:$0xf] }
  0x56   : > { %5780 = vmatprep.mubr.msk.bf16.mxu1 %vm335_vm1, %v5082_v36  ;;  %v5083_v7 = vcombine.low %v669_v45, %v679_v5  ;;  %v692_v37 = vrot.slane %v690_v12, 5  ;;  %v694_v38 = vshrl.u32 %v6965_v35, 16  ;;  %v700_v2 = vshll.u32 %v6977_v58, 16  ;;  %v5318_v45 = vld [vmem:[%s6656_s11 + $0x78] sm:$0xe] }
  0x57   : > { %5921 = vmatmul.mubr.msk.bf16.gmra.mrb[4].mxu0 %vm335_vm1, %v5345_v61  ;;  %v5348_v43 = vcombine.low %v6982_v63, %v6986_v56  ;;  %v687_v16 = vor.u32 %v686_v32, %v683_v0  ;;  %v705_v49 = vshrl.u32 %v590_v1, 16  ;;  %v708_v18 = vshll.u32 %v590_v1, 16  ;;  %v7033_v12 = vld [vmem:[%s6656_s11 + $0x80] sm:$0x1]  ;;  %v593_v5 = vld [vmem:[%s6656_s11 + $0x30] sm:$0xf] }
  0x58   : > { %5924 = vmatprep.mubr.msk.bf16.mxu0 %vm335_vm1, %v5346_v6  ;;  %v696_v25 = vrot.slane %v694_v38, 4  ;;  %v702_v55 = vrot.slane %v700_v2, 5  ;;  %v714_v20 = vshll.u32 %v6997_v14, 16  ;;  %v718_v33 = vshrl.u32 %v6997_v14, 16 }
  0x59   : > { %v688_v61 = vrot.slane %v687_v16, 4  ;;  %v707_v21 = vrot.slane %v705_v49, 4  ;;  %v710_v59 = vrot.slane %v708_v18, 5  ;;  %v724_v3 = vshll.u32 %v7002_v15, 16 }
  0x5a   : > { %v697_v24 = vor.u32 %v696_v25, %v692_v37  ;;  %v716_v50 = vrot.slane %v714_v20, 5  ;;  %v720_v54 = vrot.slane %v718_v33, 4  ;;  %v5333_v6 = vrot.slane %v5317_v19, 9  ;;  %v596_v19 = vld [vmem:[%s6656_s11 + $0x3c] sm:$0xf] }
  0x5b   : > { %v693_v26 = vsel %vm6713_vm4, %v688_v61, %v692_v37  ;;  %v711_v10 = vor.u32 %v710_v59, %v707_v21  ;;  %v726_v29 = vrot.slane %v724_v3, 5  ;;  %v2990_v30 = vrot.slane %v5253_v41, 5  ;;  %v7073_v41 = vld [vmem:[%s6656_s11 + $0x40] sm:$0xf] }
  0x5c   : > { %v698_v28 = vrot.slane %v697_v24, 4  ;;  %v721_v36 = vor.u32 %v720_v54, %v716_v50  ;;  %v2993_v39 = vrot.slane %v5254_v23, 5  ;;  %v2416_v34 = vshll.u32 %v5256_v31, 16  ;;  %v7076_v23 = vld [vmem:[%s6656_s11 + $0x44] sm:$0x1] }
  0x5d   : > { %5781 = vmatmul.mubr.msk.bf16.vlgmr.msra.gmra.mrb[0].mxu1 %vm335_vm1, %v5083_v7  ;;  %v2987_v44 = vsel %vm6840_vm7, %v2985_v9, %v2986_v62  ;;  %v712_v40 = vrot.slane %v711_v10, 4  ;;  %v2992_v51 = vrot.slane %v2990_v30, 4  ;;  %v2420_v52 = vshrl.u32 %v5256_v31, 16  ;;  %v7049_v9 = vld [vmem:[%s6656_s11 + $0x34] sm:$0xf] }
  0x5e   : > { %5813 = vmatpush3.bf16.msra.mxu1 %v6702_v27  ;;  %v703_v27 = vsel %vm6713_vm4, %v698_v28, %v702_v55  ;;  %v722_v57 = vrot.slane %v721_v36, 4  ;;  %v2991_v22 = vsel %vm6840_vm7, %v5333_v6, %v2990_v30  ;;  %v7035_v63 = vrot.slane %v2416_v34, 5  ;;  %v7057_v7 = vld [vmem:[%s6656_s11 + $0x38] sm:$0x1]  ;;  %v5259_v28 = vld [vmem:[%s6656_s11 + $0x88] sm:$0xf] }
  0x5f   : > { %5925 = vmatmul.mubr.msk.bf16.gmra.mrb[8].mxu0 %vm335_vm1, %v5347_v13  ;;  %v5084_v56 = vcombine.low %v693_v26, %v703_v27  ;;  %v717_v62 = vsel %vm6713_vm4, %v712_v40, %v716_v50  ;;  %v2994_v0 = vsel %vm6840_vm7, %v2992_v51, %v2993_v39  ;;  %v7045_v1 = vrot.slane %v2420_v52, 4  ;;  %v5319_v26 = vld [vmem:[%s6656_s11 + $0x84] sm:$0xe]  ;;  %v5260_v36 = vld [vmem:[%s6656_s11 + $0x8c] sm:$0x1] }
  0x60   : > { %5928 = vmatprep.mubr.msk.bf16.mxu0 %vm335_vm1, %v5348_v43  ;;  %v5349_v32 = vcombine.low %v6994_v8, %v2987_v44  ;;  %v727_v17 = vsel %vm6713_vm4, %v722_v57, %v726_v29  ;;  %v5334_v13 = vrot.slane %v5318_v45, 9  ;;  %v5350_v38 = vcombine.low %v2991_v22, %v2994_v0  ;;  %v5262_v51 = vld [vmem:[%s6656_s11 + $0x94] sm:$0xf]  ;;  %v5320_v52 = vld [vmem:[%s6656_s11 + $0x90] sm:$0xe] }
  0x61   : > { %5784 = vmatprep.mubr.msk.bf16.mxu1 %vm335_vm1, %v5084_v56  ;;  %v5085_v37 = vcombine.low %v717_v62, %v727_v17  ;;  %v2997_v2 = vrot.slane %v5256_v31, 5  ;;  %v3000_v16 = vrot.slane %v7033_v12, 5  ;;  %v729_v43 = vshrl.u32 %v593_v5, 16  ;;  %v5263_v56 = vld [vmem:[%s6656_s11 + $0x98] sm:$0x1] }
  0x62   : > { %v732_v49 = vshll.u32 %v593_v5, 16  ;;  %v738_v8 = vshll.u32 %v7049_v9, 16  ;;  %v742_v18 = vshrl.u32 %v7049_v9, 16  ;;  %v748_v33 = vshll.u32 %v7057_v7, 16  ;;  %v599_v17 = vld [vmem:[%s6656_s11 + $0x48] sm:$0xf] }
  0x63   : > { %v7069_v55 = vsel %vm6840_vm7, %v5334_v13, %v2997_v2  ;;  %v2999_v20 = vrot.slane %v2997_v2, 4  ;;  %v731_v61 = vrot.slane %v729_v43, 4  ;;  %v753_v54 = vshrl.u32 %v596_v19, 16 }
  0x64   : > { %v734_v21 = vrot.slane %v732_v49, 5  ;;  %v740_v59 = vrot.slane %v738_v8, 5  ;;  %v744_v3 = vrot.slane %v742_v18, 4  ;;  %v750_v50 = vrot.slane %v748_v33, 5 }
  0x65   : > { %5785 = vmatmul.mubr.msk.bf16.gmra.mrb[4].mxu1 %vm335_vm1, %v5085_v37  ;;  %v3001_v24 = vsel %vm6840_vm7, %v2999_v20, %v3000_v16  ;;  %v756_v6 = vshll.u32 %v596_v19, 16  ;;  %v762_v31 = vshll.u32 %v7073_v41, 16  ;;  %v755_v39 = vrot.slane %v753_v54, 4  ;;  %v7098_v16 = vld [vmem:[%s6656_s11 + $0x4c] sm:$0xf] }
  0x66   : > { %v5351_v10 = vcombine.low %v7069_v55, %v3001_v24  ;;  %v735_v29 = vor.u32 %v734_v21, %v731_v61  ;;  %v745_v30 = vor.u32 %v744_v3, %v740_v59  ;;  %v766_v44 = vshrl.u32 %v7073_v41, 16  ;;  %v7103_v19 = vld [vmem:[%s6656_s11 + $0x50] sm:$0x1]  ;;  %v602_v21 = vld [vmem:[%s6656_s11 + $0x54] sm:$0xf] }
  0x67   : > { %5929 = vmatmul.mubr.msk.bf16.gmra.mrb[12].mxu0 %vm335_vm1, %v5349_v32  ;;  %v758_v34 = vrot.slane %v756_v6, 5  ;;  %v772_v40 = vshll.u32 %v7076_v23, 16  ;;  %v764_v57 = vrot.slane %v762_v31, 5  ;;  %v5335_v22 = vrot.slane %v5319_v26, 9 }
  0x68   : > { %5932 = vmatprep.mubr.msk.bf16.mxu0 %vm335_vm1, %v5350_v38  ;;  %v736_v45 = vrot.slane %v735_v29, 4  ;;  %v746_v27 = vrot.slane %v745_v30, 4  ;;  %v768_v0 = vrot.slane %v766_v44, 4  ;;  %v3004_v32 = vrot.slane %v5259_v28, 5 }
  0x69   : > { %v759_v62 = vor.u32 %v758_v34, %v755_v39  ;;  %v774_v5 = vrot.slane %v772_v40, 5  ;;  %v3007_v2 = vrot.slane %v5260_v36, 5  ;;  %v5336_v38 = vrot.slane %v5320_v52, 9  ;;  %v7118_v39 = vld [vmem:[%s6656_s11 + $0x58] sm:$0xf] }
  0x6a   : > { %v741_v13 = vsel %vm6713_vm4, %v736_v45, %v740_v59  ;;  %v751_v37 = vsel %vm6713_vm4, %v746_v27, %v750_v50  ;;  %v769_v8 = vor.u32 %v768_v0, %v764_v57  ;;  %v3005_v18 = vsel %vm6840_vm7, %v5335_v22, %v3004_v32  ;;  %v5265_v52 = vld [vmem:[%s6656_s11 + $0xa0] sm:$0xf] }
  0x6b   : > { %v5086_v43 = vcombine.low %v741_v13, %v751_v37  ;;  %v760_v49 = vrot.slane %v759_v62, 4  ;;  %v3006_v55 = vrot.slane %v3004_v32, 4  ;;  %v3011_v20 = vrot.slane %v5262_v51, 5  ;;  %v5321_v62 = vld [vmem:[%s6656_s11 + $0x9c] sm:$0xe] }
  0x6c   : > { %v3014_v33 = vrot.slane %v5263_v56, 5  ;;  %v777_v61 = vshrl.u32 %v599_v17, 16  ;;  %v770_v3 = vrot.slane %v769_v8, 4  ;;  %v780_v24 = vshll.u32 %v599_v17, 16  ;;  %v5266_v56 = vld [vmem:[%s6656_s11 + $0xa4] sm:$0x1] }
  0x6d   : > { %5788 = vmatprep.mubr.msk.bf16.mxu1 %vm335_vm1, %v5086_v43  ;;  %v765_v59 = vsel %vm6713_vm4, %v760_v49, %v764_v57  ;;  %v786_v50 = vshll.u32 %v7098_v16, 16  ;;  %v3008_v54 = vsel %vm6840_vm7, %v3006_v55, %v3007_v2  ;;  %v3012_v6 = vsel %vm6840_vm7, %v5336_v38, %v3011_v20  ;;  %v5268_v13 = vld [vmem:[%s6656_s11 + $0xac] sm:$0xf]  ;;  %v5322_v37 = vld [vmem:[%s6656_s11 + $0xa8] sm:$0xe] }
  0x6e   : > { %v3013_v26 = vrot.slane %v3011_v20, 4  ;;  %v779_v29 = vrot.slane %v777_v61, 4  ;;  %v775_v30 = vsel %vm6713_vm4, %v770_v3, %v774_v5  ;;  %v5352_v31 = vcombine.low %v3005_v18, %v3008_v54  ;;  %v5269_v8 = vld [vmem:[%s6656_s11 + $0xb0] sm:$0x1]  ;;  %v605_v18 = vld [vmem:[%s6656_s11 + $0x60] sm:$0xf] }
  0x6f   : > { %5933 = vmatmul.mubr.msk.bf16.gmra.mrb[16].mxu0 %vm335_vm1, %v5351_v10  ;;  %v782_v28 = vrot.slane %v780_v24, 5  ;;  %v788_v36 = vrot.slane %v786_v50, 5  ;;  %v5087_v34 = vcombine.low %v765_v59, %v775_v30  ;;  %v790_v40 = vshrl.u32 %v7098_v16, 16  ;;  %v7125_v10 = vld [vmem:[%s6656_s11 + $0x5c] sm:$0x1] }
  0x70   : > { %v3015_v44 = vsel %vm6840_vm7, %v3013_v26, %v3014_v33  ;;  %v796_v51 = vshll.u32 %v7103_v19, 16  ;;  %5936 = vmatprep.mubr.msk.bf16.mxu0 %vm335_vm1, %v5352_v31  ;;  %v801_v57 = vshrl.u32 %v602_v21, 16  ;;  %v804_v22 = vshll.u32 %v602_v21, 16 }
  0x71   : > { %v5353_v45 = vcombine.low %v3012_v6, %v3015_v44  ;;  %v783_v27 = vor.u32 %v782_v28, %v779_v29  ;;  %5789 = vmatmul.mubr.msk.bf16.gmra.mrb[8].mxu1 %vm335_vm1, %v5087_v34  ;;  %v792_v0 = vrot.slane %v790_v40, 4  ;;  %v810_v32 = vshll.u32 %v7118_v39, 16  ;;  %v7147_v40 = vld [vmem:[%s6656_s11 + $0x64] sm:$0xf] }
  0x72   : > { %v798_v5 = vrot.slane %v796_v51, 5  ;;  %v814_v17 = vshrl.u32 %v7118_v39, 16  ;;  %v803_v38 = vrot.slane %v801_v57, 4  ;;  %v806_v43 = vrot.slane %v804_v22, 5  ;;  %v7156_v22 = vld [vmem:[%s6656_s11 + $0x68] sm:$0x1] }
  0x73   : > { %v784_v2 = vrot.slane %v783_v27, 4  ;;  %v820_v49 = vshll.u32 %v7125_v10, 16  ;;  %v793_v55 = vor.u32 %v792_v0, %v788_v36  ;;  %v812_v20 = vrot.slane %v810_v32, 5 }
  0x74   : > { %v816_v33 = vrot.slane %v814_v17, 4  ;;  %v5337_v61 = vrot.slane %v5321_v62, 9  ;;  %v807_v59 = vor.u32 %v806_v43, %v803_v38  ;;  %v3018_v24 = vrot.slane %v5265_v52, 5  ;;  %v7160_v62 = vld [vmem:[%s6656_s11 + $0x70] sm:$0xf] }
  0x75   : > { %v789_v21 = vsel %vm6713_vm4, %v784_v2, %v788_v36  ;;  %v822_v3 = vrot.slane %v820_v49, 5  ;;  %v794_v50 = vrot.slane %v793_v55, 4  ;;  %v3021_v6 = vrot.slane %v5266_v56, 5  ;;  %v608_v56 = vld [vmem:[%s6656_s11 + $0x6c] sm:$0xf] }
  0x76   : > { %v817_v54 = vor.u32 %v816_v33, %v812_v20  ;;  %v5338_v26 = vrot.slane %v5322_v37, 9  ;;  %v808_v29 = vrot.slane %v807_v59, 4  ;;  %v3019_v30 = vsel %vm6840_vm7, %v5337_v61, %v3018_v24  ;;  %v5271_v49 = vld [vmem:[%s6656_s11 + $0xb8] sm:$0xf] }
  0x77   : > { %5937 = vmatmul.mubr.msk.bf16.gmra.mrb[20].mxu0 %vm335_vm1, %v5353_v45  ;;  %v3020_v31 = vrot.slane %v3018_v24, 4  ;;  %v3025_v28 = vrot.slane %v5268_v13, 5  ;;  %v799_v36 = vsel %vm6713_vm4, %v794_v50, %v798_v5  ;;  %v3028_v44 = vrot.slane %v5269_v8, 5  ;;  %v7165_v13 = vld [vmem:[%s6656_s11 + $0x74] sm:$0x1] }
  0x78   : > { %v818_v34 = vrot.slane %v817_v54, 4  ;;  %v825_v51 = vshrl.u32 %v605_v18, 16  ;;  %v5088_v52 = vcombine.low %v789_v21, %v799_v36  ;;  %v813_v45 = vsel %vm6713_vm4, %v808_v29, %v812_v20  ;;  %v5323_v24 = vld [vmem:[%s6656_s11 + $0xb4] sm:$0xe]  ;;  %v5324_v29 = vld [vmem:[%s6656_s11 + $0xc0] sm:$0xe] }
  0x79   : > { %v3022_v27 = vsel %vm6840_vm7, %v3020_v31, %v3021_v6  ;;  %v3026_v57 = vsel %vm6840_vm7, %v5338_v26, %v3025_v28  ;;  %v3027_v32 = vrot.slane %v3025_v28, 4  ;;  %v828_v2 = vshll.u32 %v605_v18, 16 }
  0x7a   : > { %v823_v0 = vsel %vm6713_vm4, %v818_v34, %v822_v3  ;;  %v5354_v5 = vcombine.low %v3019_v30, %v3022_v27  ;;  %v827_v17 = vrot.slane %v825_v51, 4  ;;  %5792 = vmatprep.mubr.msk.bf16.mxu1 %vm335_vm1, %v5088_v52  ;;  %v834_v38 = vshll.u32 %v7147_v40, 16  ;;  %v5272_v3 = vld [vmem:[%s6656_s11 + $0xbc] sm:$0x1]  ;;  %v5274_v34 = vld [vmem:[%s6656_s11 + $0xc4] sm:$0xf] }
  0x7b   : > { %v5089_v37 = vcombine.low %v813_v45, %v823_v0  ;;  %v838_v43 = vshrl.u32 %v7147_v40, 16  ;;  %v3029_v8 = vsel %vm6840_vm7, %v3027_v32, %v3028_v44  ;;  %v844_v55 = vshll.u32 %v7156_v22, 16  ;;  %v5275_v27 = vld [vmem:[%s6656_s11 + $0xc8] sm:$0x1] }
  0x7c   : > { %5940 = vmatprep.mubr.msk.bf16.mxu0 %vm335_vm1, %v5354_v5  ;;  %v849_v20 = vshrl.u32 %v608_v56, 16  ;;  %v852_v33 = vshll.u32 %v608_v56, 16  ;;  %v5355_v61 = vcombine.low %v3026_v57, %v3029_v8  ;;  %v830_v18 = vrot.slane %v828_v2, 5  ;;  %v611_v57 = vld [vmem:[%s6656_s11 + $0x78] sm:$0xf] }
  0x7d   : > { %5793 = vmatmul.mubr.msk.bf16.gmra.mrb[12].mxu1 %vm335_vm1, %v5089_v37  ;;  %v836_v21 = vrot.slane %v834_v38, 5  ;;  %v840_v59 = vrot.slane %v838_v43, 4  ;;  %v846_v50 = vrot.slane %v844_v55, 5  ;;  %v858_v26 = vshll.u32 %v7160_v62, 16  ;;  %v7191_v43 = vld [vmem:[%s8327_s1 + $0x6] sm:$0x3] }
  0x7e   : > { %v851_v54 = vrot.slane %v849_v20, 4  ;;  %v854_v6 = vrot.slane %v852_v33, 5  ;;  %v831_v30 = vor.u32 %v830_v18, %v827_v17  ;;  %v862_v28 = vshrl.u32 %v7160_v62, 16  ;;  %v7198_v33 = vld [vmem:[%s6656_s11 + $0x7c] sm:$0xf]  ;;  %6343 = vmatprep.subr.msk.bf16.mxu1 %vm384_vm0, %v7191_v43 }
  0x7f   : > { %5941 = vmatmul.mubr.msk.bf16.gmra.mrb[24].mxu0 %vm335_vm1, %v5355_v61  ;;  %v841_v31 = vor.u32 %v840_v59, %v836_v21  ;;  %v868_v36 = vshll.u32 %v7165_v13, 16  ;;  %v860_v51 = vrot.slane %v858_v26, 5  ;;  %v5339_v52 = vrot.slane %v5323_v24, 9  ;;  %v7201_v61 = vld [vmem:[%s6656_s11 + $0x80] sm:$0x1] }
  0x80   : > { %v855_v44 = vor.u32 %v854_v6, %v851_v54  ;;  %v3032_v45 = vrot.slane %v5271_v49, 5  ;;  %v832_v56 = vrot.slane %v831_v30, 4  ;;  %v864_v5 = vrot.slane %v862_v28, 4  ;;  %v614_v24 = vld [vmem:[%s6656_s11 + $0x84] sm:$0xf] }
  0x81   : > { %v842_v0 = vrot.slane %v841_v31, 4  ;;  %v870_v32 = vrot.slane %v868_v36, 5  ;;  %v3035_v38 = vrot.slane %v5272_v3, 5  ;;  %v5340_v20 = vrot.slane %v5324_v29, 9  ;;  %v7211_v29 = vld [vmem:[%s6656_s11 + $0x88] sm:$0xf] }
  0x82   : > { %v856_v37 = vrot.slane %v855_v44, 4  ;;  %v3033_v17 = vsel %vm6840_vm7, %v5339_v52, %v3032_v45  ;;  %v3034_v2 = vrot.slane %v3032_v45, 4  ;;  %v837_v49 = vsel %vm6713_vm4, %v832_v56, %v836_v21  ;;  %v7223_v45 = vld [vmem:[%s6656_s11 + $0x8c] sm:$0x1] }
  0x83   : > { %v847_v8 = vsel %vm6713_vm4, %v842_v0, %v846_v50  ;;  %v865_v55 = vor.u32 %v864_v5, %v860_v51  ;;  %v3039_v3 = vrot.slane %v5274_v34, 5  ;;  %v3042_v6 = vrot.slane %v5275_v27, 5  ;;  %v6424_v27 = vld [vmem:[%s6656_s11 + $0x18] sm:$0xff]  }
  0x84   : > { %v5090_v18 = vcombine.low %v837_v49, %v847_v8  ;;  %v861_v59 = vsel %vm6713_vm4, %v856_v37, %v860_v51  ;;  %v3036_v21 = vsel %vm6840_vm7, %v3034_v2, %v3035_v38  ;;  %v873_v26 = vshrl.u32 %v611_v57, 16  ;;  %v617_v37 = vld [vmem:[%s6656_s11 + $0x90] sm:$0xf]  ;;  %v7230_v49 = vld [vmem:[%s6656_s11 + $0x94] sm:$0xf] }
  0x85   : > { %v866_v50 = vrot.slane %v865_v55, 4  ;;  %v5356_v54 = vcombine.low %v3033_v17, %v3036_v21  ;;  %v3040_v30 = vsel %vm6840_vm7, %v5340_v20, %v3039_v3  ;;  %v3041_v31 = vrot.slane %v3039_v3, 4 }
  0x86   : > { %5796 = vmatprep.mubr.msk.bf16.mxu1 %vm335_vm1, %v5090_v18  ;;  %v876_v28 = vshll.u32 %v611_v57, 16  ;;  %v882_v36 = vshll.u32 %v7198_v33, 16  ;;  %v875_v44 = vrot.slane %v873_v26, 4  ;;  %v886_v51 = vshrl.u32 %v7198_v33, 16 }
  0x87   : > { %v871_v34 = vsel %vm6713_vm4, %v866_v50, %v870_v32  ;;  %5944 = vmatprep.mubr.msk.bf16.mxu0 %vm335_vm1, %v5356_v54  ;;  %v892_v52 = vshll.u32 %v7201_v61, 16  ;;  %v3043_v57 = vsel %vm6840_vm7, %v3041_v31, %v3042_v6  ;;  %v897_v38 = vshrl.u32 %v614_v24, 16 }
  0x88   : > { %v5091_v56 = vcombine.low %v861_v59, %v871_v34  ;;  %v878_v0 = vrot.slane %v876_v28, 5  ;;  %v884_v5 = vrot.slane %v882_v36, 5  ;;  %v5357_v32 = vcombine.low %v3040_v30, %v3043_v57  ;;  %v7236_v59 = vld [vmem:[%s6656_s11 + $0x98] sm:$0x1] }
  0x89   : > { %v888_v17 = vrot.slane %v886_v51, 4  ;;  %v894_v2 = vrot.slane %v892_v52, 5  ;;  %v900_v55 = vshll.u32 %v614_v24, 16  ;;  %v906_v20 = vshll.u32 %v7211_v29, 16  ;;  %v620_v24 = vld [vmem:[%s6656_s11 + $0x9c] sm:$0xf] }
  0x8a   : > { %5797 = vmatmul.mubr.msk.bf16.gmra.mrb[16].mxu1 %vm335_vm1, %v5091_v56  ;;  %v879_v8 = vor.u32 %v878_v0, %v875_v44  ;;  %v910_v18 = vshrl.u32 %v7211_v29, 16  ;;  %5945 = vmatmul.mubr.msk.bf16.gmra.mrb[28].mxu0 %vm335_vm1, %v5357_v32  ;;  %v899_v3 = vrot.slane %v897_v38, 4  ;;  %v916_v50 = vshll.u32 %v7223_v45, 16  ;;  %v7243_v51 = vld [vmem:[%s6656_s11 + $0xa0] sm:$0xf]  ;;  %v6425_v32 = vld [vmem:[%s6656_s11 + $0x24] sm:$0xff]  }
  0x8b   : > { %v889_v21 = vor.u32 %v888_v17, %v884_v5  ;;  %v921_v54 = vshrl.u32 %v617_v37, 16  ;;  %v902_v26 = vrot.slane %v900_v55, 5  ;;  %v908_v30 = vrot.slane %v906_v20, 5  ;;  %5950 = vmatprep.mubr.msk.bf16.mxu0 %vm335_vm1, %v6424_v27 }
  0x8c   : > { %v880_v6 = vrot.slane %v879_v8, 4  ;;  %v912_v31 = vrot.slane %v910_v18, 4  ;;  %v918_v36 = vrot.slane %v916_v50, 5  ;;  %v924_v44 = vshll.u32 %v617_v37, 16  ;;  %v7254_v8 = vld [vmem:[%s6656_s11 + $0xa4] sm:$0x1] }
  0x8d   : > { %v890_v28 = vrot.slane %v889_v21, 4  ;;  %v923_v34 = vrot.slane %v921_v54, 4  ;;  %v903_v56 = vor.u32 %v902_v26, %v899_v3  ;;  %v930_v0 = vshll.u32 %v7230_v49, 16  ;;  %v6426_v21 = vld [vmem:[%s6656_s11 + $0x30] sm:$0xff]   ;;  %v623_v26 = vld [vmem:[%s6656_s11 + $0xa8] sm:$0xf] }
  0x8e   : > { %v885_v52 = vsel %vm6713_vm4, %v880_v6, %v884_v5  ;;  %v913_v57 = vor.u32 %v912_v31, %v908_v30  ;;  %v926_v17 = vrot.slane %v924_v44, 5  ;;  %v934_v38 = vshrl.u32 %v7230_v49, 16 }
  0x8f   : > { %v895_v27 = vsel %vm6713_vm4, %v890_v28, %v894_v2  ;;  %v940_v37 = vshll.u32 %v7236_v59, 16  ;;  %v904_v20 = vrot.slane %v903_v56, 4  ;;  %v932_v18 = vrot.slane %v930_v0, 5 }
  0x90   : > { %v5092_v55 = vcombine.low %v885_v52, %v895_v27  ;;  %v914_v5 = vrot.slane %v913_v57, 4  ;;  %v927_v3 = vor.u32 %v926_v17, %v923_v34  ;;  %v936_v50 = vrot.slane %v934_v38, 4  ;;  %v7265_v52 = vld [vmem:[%s6656_s11 + $0xac] sm:$0xf]  ;;  %v7276_v38 = vld [vmem:[%s6656_s11 + $0xb0] sm:$0x1] }
  0x91   : > { %v942_v54 = vrot.slane %v940_v37, 5  ;;  %v945_v6 = vshrl.u32 %v620_v24, 16  ;;  %v909_v2 = vsel %vm6713_vm4, %v904_v20, %v908_v30  ;;  %v948_v28 = vshll.u32 %v620_v24, 16 }
  0x92   : > { %5800 = vmatprep.mubr.msk.bf16.mxu1 %vm335_vm1, %v5092_v55  ;;  %v919_v31 = vsel %vm6713_vm4, %v914_v5, %v918_v36  ;;  %v954_v44 = vshll.u32 %v7243_v51, 16  ;;  %5951 = vmatmul.mubr.msk.bf16.vlgmr.msra.gmra.mrb[0].mxu0 %vm335_vm1, %v6425_v32  ;;  %v928_v34 = vrot.slane %v927_v3, 4  ;;  %v937_v57 = vor.u32 %v936_v50, %v932_v18  ;;  %v626_v50 = vld [vmem:[%s6656_s11 + $0xb4] sm:$0xf] }
  0x93   : > { %v5093_v56 = vcombine.low %v909_v2, %v919_v31  ;;  %v947_v0 = vrot.slane %v945_v6, 4  ;;  %5983 = vmatpush3.bf16.msra.mxu0 %v6720_v46  ;;  %v950_v27 = vrot.slane %v948_v28, 5  ;;  %v958_v36 = vshrl.u32 %v7243_v51, 16  ;;  %5954 = vmatprep.mubr.msk.bf16.mxu0 %vm335_vm1, %v6426_v21  ;;  %v6427_v6 = vld [vmem:[%s6656_s11 + $0x3c] sm:$0xff]   ;;  %v7285_v28 = vld [vmem:[%s6656_s11 + $0xb8] sm:$0xf] }
  0x94   : > { %v956_v30 = vrot.slane %v954_v44, 5  ;;  %v964_v24 = vshll.u32 %v7254_v8, 16  ;;  %v933_v32 = vsel %vm6713_vm4, %v928_v34, %v932_v18  ;;  %v938_v17 = vrot.slane %v937_v57, 4  ;;  %v6428_v57 = vld [vmem:[%s6656_s11 + $0x48] sm:$0xff]  }
  0x95   : > { %5801 = vmatmul.mubr.msk.bf16.gmra.mrb[20].mxu1 %vm335_vm1, %v5093_v56  ;;  %v969_v46 = vshrl.u32 %v623_v26, 16  ;;  %v972_v37 = vshll.u32 %v623_v26, 16  ;;  %v951_v55 = vor.u32 %v950_v27, %v947_v0  ;;  %v960_v20 = vrot.slane %v958_v36, 4 }
  0x96   : > { %v966_v5 = vrot.slane %v964_v24, 5  ;;  %v978_v3 = vshll.u32 %v7265_v52, 16  ;;  %v943_v21 = vsel %vm6713_vm4, %v938_v17, %v942_v54  ;;  %v982_v18 = vshrl.u32 %v7265_v52, 16  ;;  %v7292_v54 = vld [vmem:[%s8327_s1 + $0x10] sm:$0x3] }
  0x97   : > { %v971_v2 = vrot.slane %v969_v46, 4  ;;  %v974_v31 = vrot.slane %v972_v37, 5  ;;  %v5094_v44 = vcombine.low %v933_v32, %v943_v21  ;;  %v952_v26 = vrot.slane %v951_v55, 4  ;;  %v7298_v46 = vld [vmem:[%s6656_s11 + $0xbc] sm:$0x1]  ;;  %6349 = vmatprep.subr.msk.bf16.mxu0 %vm384_vm0, %v7292_v54 }
  0x98   : > { %v961_v56 = vor.u32 %v960_v20, %v956_v30  ;;  %v980_v34 = vrot.slane %v978_v3, 5  ;;  %v984_v27 = vrot.slane %v982_v18, 4  ;;  %v988_v36 = vshll.u32 %v7276_v38, 16 }
  0x99   : > { %v975_v0 = vor.u32 %v974_v31, %v971_v2  ;;  %v993_v24 = vshrl.u32 %v626_v50, 16  ;;  %5804 = vmatprep.mubr.msk.bf16.mxu1 %vm335_vm1, %v5094_v44  ;;  %v957_v32 = vsel %vm6713_vm4, %v952_v26, %v956_v30  ;;  %v996_v37 = vshll.u32 %v626_v50, 16  ;;  %v1310_v31 = vld [vmem:[%s6656_s11] sm:$0xe]  ;;  %v1311_v26 = vld [vmem:[%s6656_s11 + $0xc] sm:$0xe] }
  0x9a   : > { %v962_v17 = vrot.slane %v961_v56, 4  ;;  %v1002_v55 = vshll.u32 %v7285_v28, 16  ;;  %5955 = vmatmul.mubr.msk.bf16.gmra.mrb[4].mxu0 %vm335_vm1, %v6427_v6  ;;  %v985_v3 = vor.u32 %v984_v27, %v980_v34  ;;  %v990_v21 = vrot.slane %v988_v36, 5 }
  0x9b   : > { %v976_v20 = vrot.slane %v975_v0, 4  ;;  %v995_v2 = vrot.slane %v993_v24, 4  ;;  %v998_v18 = vrot.slane %v996_v37, 5  ;;  %v1006_v50 = vshrl.u32 %v7285_v28, 16  ;;  %5958 = vmatprep.mubr.msk.bf16.mxu0 %vm335_vm1, %v6428_v57  ;;  %v1312_v37 = vld [vmem:[%s6656_s11 + $0x18] sm:$0xe] }
  0x9c   : > { %v967_v30 = vsel %vm6713_vm4, %v962_v17, %v966_v5  ;;  %v1004_v44 = vrot.slane %v1002_v55, 5  ;;  %v986_v0 = vrot.slane %v985_v3, 4  ;;  %v1012_v27 = vshll.u32 %v7298_v46, 16  ;;  %v6456_v5 = vld [vmem:[%s6656_s11 + $0x4] sm:$0xf] }
  0x9d   : > { %v5095_v56 = vcombine.low %v957_v32, %v967_v30  ;;  %v981_v6 = vsel %vm6713_vm4, %v976_v20, %v980_v34  ;;  %v999_v36 = vor.u32 %v998_v18, %v995_v2  ;;  %v1008_v24 = vrot.slane %v1006_v50, 4  ;;  %v6429_v32 = vld [vmem:[%s6656_s11 + $0x54] sm:$0xff]   ;;  %v6430_v18 = vld [vmem:[%s6656_s11 + $0x60] sm:$0xff]  }
  0x9e   : > { %v5114_v25 = vrot.slane %v1310_v31, 9  ;;  %v1379_v17 = vrot.slane %v6456_v5, 5  ;;  %v991_v57 = vsel %vm6713_vm4, %v986_v0, %v990_v21  ;;  %v1014_v55 = vrot.slane %v1012_v27, 5 }
  0x9f   : > { %5805 = vmatmul.mubr.msk.bf16.gmra.mrb[24].mxu1 %vm335_vm1, %v5095_v56  ;;  %v1382_v30 = vrot.slane %v6918_v48, 5  ;;  %v5115_v34 = vrot.slane %v1311_v26, 9  ;;  %v5096_v20 = vcombine.low %v981_v6, %v991_v57  ;;  %v1000_v3 = vrot.slane %v999_v36, 4 }
  0xa0   : > { %v1009_v2 = vor.u32 %v1008_v24, %v1004_v44  ;;  %v1380_v31 = vsel %vm6840_vm7, %v5114_v25, %v1379_v17  ;;  %v1381_v50 = vrot.slane %v1379_v17, 4  ;;  %v1386_v56 = vrot.slane %v6927_v60, 5  ;;  %v1313_v25 = vld [vmem:[%s6656_s11 + $0x24] sm:$0xe] }
  0xa1   : > { %v1389_v5 = vrot.slane %v6938_v11, 5  ;;  %v5116_v21 = vrot.slane %v1312_v37, 9  ;;  %5808 = vmatprep.mubr.msk.bf16.mxu1 %vm335_vm1, %v5096_v20  ;;  %v1005_v48 = vsel %vm6713_vm4, %v1000_v3, %v1004_v44  ;;  %v1393_v6 = vrot.slane %v6965_v35, 5  ;;  %v1314_v35 = vld [vmem:[%s6656_s11 + $0x30] sm:$0xe] }
  0xa2   : > { %v1010_v26 = vrot.slane %v1009_v2, 4  ;;  %v1396_v0 = vrot.slane %v6977_v58, 5  ;;  %5959 = vmatmul.mubr.msk.bf16.gmra.mrb[8].mxu0 %vm335_vm1, %v6429_v32  ;;  %v1383_v60 = vsel %vm6840_vm7, %v1381_v50, %v1382_v30  ;;  %v7336_v11 = vsel %vm6840_vm7, %v5115_v34, %v1386_v56  ;;  %v1315_v34 = vld [vmem:[%s6656_s11 + $0x3c] sm:$0xe]  ;;  %v1317_v50 = vld [vmem:[%s6656_s11 + $0x54] sm:$0xe] }
  0xa3   : > { %v1388_v27 = vrot.slane %v1386_v56, 4  ;;  %v7340_v44 = vsel %vm384_vm0, %v7191_v43, 0  ;;  %v5131_v36 = vcombine.low %v1380_v31, %v1383_v60  ;;  %5962 = vmatprep.mubr.msk.bf16.mxu0 %vm335_vm1, %v6430_v18  ;;  %v1394_v24 = vsel %vm6840_vm7, %v5116_v21, %v1393_v6  ;;  %v6431_v43 = vld [vmem:[%s6656_s11 + $0x6c] sm:$0xff]   ;;  %v6432_v2 = vld [vmem:[%s6656_s11 + $0x78] sm:$0xff]   ;;  %v1316_v18 = vld [vmem:[%s6656_s11 + $0x48] sm:$0xe] }
  0xa4   : > { %v1015_v58 = vsel %vm6713_vm4, %v1010_v26, %v1014_v55  ;;  %v1395_v17 = vrot.slane %v1393_v6, 4  ;;  %v5117_v32 = vrot.slane %v1313_v25, 9  ;;  %v1400_v30 = vrot.slane %v6997_v14, 5 }
  0xa5   : > { %v5097_v37 = vcombine.low %v1005_v48, %v1015_v58  ;;  %v1390_v57 = vsel %vm6840_vm7, %v1388_v27, %v1389_v5  ;;  %v1403_v3 = vrot.slane %v7002_v15, 5  ;;  %v5118_v31 = vrot.slane %v1314_v35, 9 }
  0xa6   : > { %v5132_v55 = vcombine.low %v7336_v11, %v1390_v57  ;;  %v1397_v20 = vsel %vm6840_vm7, %v1395_v17, %v1396_v0  ;;  %v7363_v5 = vsel %vm6840_vm7, %v5117_v32, %v1400_v30  ;;  %v1402_v14 = vrot.slane %v1400_v30, 4 }
  0xa7   : > { %5809 = vmatmul.mubr.msk.bf16.gmra.mrb[28].mxu1 %vm335_vm1, %v5097_v37  ;;  %v5133_v56 = vcombine.low %v1394_v24, %v1397_v20  ;;  %v1407_v21 = vrot.slane %v7049_v9, 5  ;;  %v1410_v48 = vrot.slane %v7057_v7, 5  ;;  %v5119_v26 = vrot.slane %v1315_v34, 9  ;;  %v1318_v24 = vld [vmem:[%s6656_s11 + $0x60] sm:$0xe]  ;;  %v6433_v20 = vld [vmem:[%s6656_s11 + $0x84] sm:$0xff]  }
  0xa8   : > { %5814 = vmatprep.mubr.msk.bf16.mxu1 %vm335_vm1, %v5131_v36  ;;  %v1414_v15 = vrot.slane %v7073_v41, 5  ;;  %v1417_v6 = vrot.slane %v7076_v23, 5  ;;  %v7372_v0 = vsel %vm6840_vm7, %v1402_v14, %v1403_v3  ;;  %v5120_v9 = vrot.slane %v1316_v18, 9 }
  0xa9   : > { %v7376_v25 = vsel %vm6840_vm7, %v5118_v31, %v1407_v21  ;;  %v1409_v60 = vrot.slane %v1407_v21, 4  ;;  %v5134_v7 = vcombine.low %v7363_v5, %v7372_v0  ;;  %v1421_v11 = vrot.slane %v7098_v16, 5 }
  0xaa   : > { %v7382_v41 = vsel %vm6840_vm7, %v5119_v26, %v1414_v15  ;;  %v1416_v23 = vrot.slane %v1414_v15, 4  ;;  %5963 = vmatmul.mubr.msk.bf16.gmra.mrb[12].mxu0 %vm335_vm1, %v6431_v43  ;;  %v1424_v35 = vrot.slane %v7103_v19, 5  ;;  %v5121_v58 = vrot.slane %v1317_v50, 9  ;;  %v1319_v43 = vld [vmem:[%s6656_s11 + $0x6c] sm:$0xe] }
  0xab   : > { %v7388_v27 = vsel %vm6840_vm7, %v1409_v60, %v1410_v48  ;;  %v1428_v36 = vrot.slane %v7118_v39, 5  ;;  %5966 = vmatprep.mubr.msk.bf16.mxu0 %vm335_vm1, %v6432_v2  ;;  %v7402_v37 = vsel %vm6840_vm7, %v5120_v9, %v1421_v11  ;;  %v1423_v57 = vrot.slane %v1421_v11, 4  ;;  %v1320_v19 = vld [vmem:[%s6656_s11 + $0x78] sm:$0xe]  ;;  %v1321_v48 = vld [vmem:[%s6656_s11 + $0x84] sm:$0xe] }
  0xac   : > { %v5135_v17 = vcombine.low %v7376_v25, %v7388_v27  ;;  %v7398_v16 = vsel %vm6840_vm7, %v1416_v23, %v1417_v6  ;;  %v1431_v34 = vrot.slane %v7125_v10, 5  ;;  %v5122_v2 = vrot.slane %v1318_v24, 9  ;;  %v5439_v6 = vld [vmem:[%s6656_s11 + $0x18] sm:$0xf]  ;;  %v7446_v9 = vld [vmem:[%s6656_s11 + $0x1c] sm:$0xf] }
  0xad   : > { %v5136_v39 = vcombine.low %v7382_v41, %v7398_v16  ;;  %v7410_v32 = vsel %vm6840_vm7, %v5121_v58, %v1428_v36  ;;  %v1430_v30 = vrot.slane %v1428_v36, 4  ;;  %v7416_v3 = vsel %vm6840_vm7, %v1423_v57, %v1424_v35  ;;  %v6457_v23 = vld [vmem:[%s8327_s1 + $0x8] sm:$0x3]  ;;  %v7459_v36 = vld [vmem:[%s6656_s11 + $0x20] sm:$0x1] }
  0xae   : > { %v1435_v31 = vrot.slane %v7147_v40, 5  ;;  %v1438_v18 = vrot.slane %v7156_v22, 5  ;;  %v5137_v50 = vcombine.low %v7402_v37, %v7416_v3  ;;  %v5123_v10 = vrot.slane %v1319_v43, 9  ;;  %v6434_v40 = vld [vmem:[%s6656_s11 + $0x90] sm:$0xff]   ;;  %v5442_v43 = vld [vmem:[%s6656_s11 + $0x24] sm:$0xf] }
  0xaf   : > { %5815 = vmatmul.mubr.msk.bf16.vlgmr.msra.gmra.mrb[0].mxu1 %vm335_vm1, %v5132_v55  ;;  %v7425_v14 = vsel %vm6840_vm7, %v1430_v30, %v1431_v34  ;;  %v1442_v21 = vrot.slane %v7160_v62, 5  ;;  %v1445_v15 = vrot.slane %v7165_v13, 5  ;;  %v1449_v60 = vrot.slane %v7198_v33, 5 }
  0xb0   : > { %5818 = vmatprep.mubr.msk.bf16.mxu1 %vm335_vm1, %v5133_v56  ;;  %5847 = vmatpush3.bf16.msra.mxu1 %v7340_v44  ;;  %v5138_v22 = vcombine.low %v7410_v32, %v7425_v14  ;;  %v7436_v55 = vsel %vm6840_vm7, %v5122_v2, %v1435_v31  ;;  %v1437_v26 = vrot.slane %v1435_v31, 4  ;;  %v5124_v44 = vrot.slane %v1320_v19, 9 }
  0xb1   : > { %v7442_v62 = vsel %vm6840_vm7, %v5123_v10, %v1442_v21  ;;  %v1444_v56 = vrot.slane %v1442_v21, 4  ;;  %6345 = vmatprep.subr.msk.bf16.mxu1 %vm384_vm0, %v6457_v23  ;;  %v1452_v11 = vrot.slane %v7201_v61, 5  ;;  %v5125_v35 = vrot.slane %v1321_v48, 9  ;;  %v6436_v23 = vld [vmem:[%s6656_s11 + $0xa8] sm:$0xff]  }
  0xb2   : > { %v7454_v13 = vsel %vm6840_vm7, %v1437_v26, %v1438_v18  ;;  %v1456_v58 = vrot.slane %v7211_v29, 5  ;;  %5967 = vmatmul.mubr.msk.bf16.gmra.mrb[16].mxu0 %vm335_vm1, %v6433_v20  ;;  %v7470_v57 = vsel %vm6840_vm7, %v5124_v44, %v1449_v60  ;;  %v1451_v61 = vrot.slane %v1449_v60, 4  ;;  %v7498_v26 = vld [vmem:[%s6656_s11 + $0x2c] sm:$0x1] }
  0xb3   : > { %v5139_v33 = vcombine.low %v7436_v55, %v7454_v13  ;;  %v7466_v24 = vsel %vm6840_vm7, %v1444_v56, %v1445_v15  ;;  %5970 = vmatprep.mubr.msk.bf16.mxu0 %vm335_vm1, %v6434_v40  ;;  %v1459_v34 = vrot.slane %v7223_v45, 5  ;;  %v3746_v2 = vshrl.u32 %v5439_v6, 16  ;;  %v7495_v40 = vld [vmem:[%s6656_s11 + $0x28] sm:$0xf]  ;;  %v6435_v15 = vld [vmem:[%s6656_s11 + $0x9c] sm:$0xff]  }
  0xb4   : > { %v5140_v29 = vcombine.low %v7442_v62, %v7466_v24  ;;  %v7478_v19 = vsel %vm6840_vm7, %v5125_v35, %v1456_v58  ;;  %v1458_v30 = vrot.slane %v1456_v58, 4  ;;  %v7483_v20 = vsel %vm6840_vm7, %v1451_v61, %v1452_v11  ;;  %v7615_v55 = vld [vmem:[%s6656_s11 + $0x50] sm:$0x1] }
  0xb5   : > { %v3749_v31 = vshll.u32 %v5439_v6, 16  ;;  %v3755_v18 = vshll.u32 %v7446_v9, 16  ;;  %v5141_v10 = vcombine.low %v7470_v57, %v7483_v20  ;;  %v3759_v48 = vshrl.u32 %v7446_v9, 16 }
  0xb6   : > { %v7490_v21 = vsel %vm6840_vm7, %v1458_v30, %v1459_v34  ;;  %v3765_v45 = vshll.u32 %v7459_v36, 16  ;;  %v3748_v56 = vrot.slane %v3746_v2, 4  ;;  %v3770_v5 = vshrl.u32 %v5442_v43, 16  ;;  %v1322_v34 = vld [vmem:[%s6656_s11 + $0x90] sm:$0xe] }
  0xb7   : > { %5819 = vmatmul.mubr.msk.bf16.gmra.mrb[4].mxu1 %vm335_vm1, %v5134_v7  ;;  %v5142_v6 = vcombine.low %v7478_v19, %v7490_v21  ;;  %v3751_v44 = vrot.slane %v3749_v31, 5  ;;  %v3757_v60 = vrot.slane %v3755_v18, 5  ;;  %v3761_v11 = vrot.slane %v3759_v48, 4 }
  0xb8   : > { %5822 = vmatprep.mubr.msk.bf16.mxu1 %vm335_vm1, %v5135_v17  ;;  %v3767_v35 = vrot.slane %v3765_v45, 5  ;;  %v3773_v0 = vshll.u32 %v5442_v43, 16  ;;  %v3779_v58 = vshll.u32 %v7495_v40, 16  ;;  %v3783_v61 = vshrl.u32 %v7495_v40, 16  ;;  %v1323_v17 = vld [vmem:[%s6656_s11 + $0x9c] sm:$0xe] }
  0xb9   : > { %v3752_v7 = vor.u32 %v3751_v44, %v3748_v56  ;;  %v3789_v30 = vshll.u32 %v7498_v26, 16  ;;  %v3762_v2 = vor.u32 %v3761_v11, %v3757_v60  ;;  %v3772_v31 = vrot.slane %v3770_v5, 4  ;;  %v5445_v56 = vld [vmem:[%s6656_s11 + $0x30] sm:$0xf] }
  0xba   : > { %v3775_v25 = vrot.slane %v3773_v0, 5  ;;  %v7518_v27 = vsel %vm384_vm0, %v7292_v54, 0  ;;  %5971 = vmatmul.mubr.msk.bf16.gmra.mrb[20].mxu0 %vm335_vm1, %v6435_v15  ;;  %v3781_v18 = vrot.slane %v3779_v58, 5  ;;  %v3785_v48 = vrot.slane %v3783_v61, 4  ;;  %v6437_v58 = vld [vmem:[%s6656_s11 + $0xb4] sm:$0xff]  }
  0xbb   : > { %v3753_v43 = vrot.slane %v3752_v7, 4  ;;  %v3791_v45 = vrot.slane %v3789_v30, 5  ;;  %5974 = vmatprep.mubr.msk.bf16.mxu0 %vm335_vm1, %v6436_v23  ;;  %v3763_v44 = vrot.slane %v3762_v2, 4  ;;  %v5126_v5 = vrot.slane %v1322_v34, 9  ;;  %v7536_v34 = vld [vmem:[%s6656_s11 + $0x34] sm:$0xf] }
  0xbc   : > { %v3776_v11 = vor.u32 %v3775_v25, %v3772_v31  ;;  %v1463_v0 = vrot.slane %v7230_v49, 5  ;;  %v3786_v53 = vor.u32 %v3785_v48, %v3781_v18  ;;  %v1466_v15 = vrot.slane %v7236_v59, 5  ;;  %v6438_v59 = vld [vmem:[%s6656_s11 + $0xc0] sm:$0xff]   ;;  %v7548_v25 = vld [vmem:[%s6656_s11 + $0x38] sm:$0x1] }
  0xbd   : > { %v3758_v54 = vsel %vm6713_vm4, %v3753_v43, %v3757_v60  ;;  %v5127_v7 = vrot.slane %v1323_v17, 9  ;;  %v3768_v61 = vsel %vm6713_vm4, %v3763_v44, %v3767_v35  ;;  %v1470_v2 = vrot.slane %v7243_v51, 5  ;;  %v5448_v17 = vld [vmem:[%s6656_s11 + $0x3c] sm:$0xf]  ;;  %v7562_v51 = vld [vmem:[%s6656_s11 + $0x40] sm:$0xf] }
  0xbe   : > { %v3777_v30 = vrot.slane %v3776_v11, 4  ;;  %v7533_v23 = vsel %vm6840_vm7, %v5126_v5, %v1463_v0  ;;  %v1465_v49 = vrot.slane %v1463_v0, 4  ;;  %v7543_v60 = vcombine.low %v3758_v54, %v3768_v61  ;;  %v7573_v43 = vld [vmem:[%s6656_s11 + $0x44] sm:$0x1] }
  0xbf   : > { %5823 = vmatmul.mubr.msk.bf16.gmra.mrb[8].mxu1 %vm335_vm1, %v5136_v39  ;;  %v3787_v35 = vrot.slane %v3786_v53, 4  ;;  %v1473_v31 = vrot.slane %v7254_v8, 5  ;;  %v3794_v39 = vshrl.u32 %v5445_v56, 16  ;;  %v3797_v53 = vshll.u32 %v5445_v56, 16 }
  0xc0   : > { %5826 = vmatprep.mubr.msk.bf16.mxu1 %vm335_vm1, %v5137_v50  ;;  %v3782_v41 = vsel %vm6713_vm4, %v3777_v30, %v3781_v18  ;;  %v7558_v16 = vsel %vm6840_vm7, %v1465_v49, %v1466_v15  ;;  %v7570_v3 = vsel %vm6840_vm7, %v5127_v7, %v1470_v2  ;;  %v1472_v50 = vrot.slane %v1470_v2, 4 }
  0xc1   : > { %v3792_v8 = vsel %vm6713_vm4, %v3787_v35, %v3791_v45  ;;  %v5143_v37 = vcombine.low %v7533_v23, %v7558_v16  ;;  %v3796_v48 = vrot.slane %v3794_v39, 4  ;;  %v3799_v56 = vrot.slane %v3797_v53, 5  ;;  %v6439_v53 = vld [vmem:[%s6656_s11 + $0xcc] sm:$0xff]  }
  0xc2   : > { %v7575_v18 = vcombine.low %v3782_v41, %v3792_v8  ;;  %v3803_v44 = vshll.u32 %v7536_v34, 16  ;;  %5975 = vmatmul.mubr.msk.bf16.gmra.mrb[24].mxu0 %vm335_vm1, %v6437_v58  ;;  %v7581_v45 = vsel %vm6840_vm7, %v1472_v50, %v1473_v31  ;;  %v3807_v11 = vshrl.u32 %v7536_v34, 16  ;;  %v1324_v58 = vld [vmem:[%s6656_s11 + $0xa8] sm:$0xe] }
  0xc3   : > { %v3813_v5 = vshll.u32 %v7548_v25, 16  ;;  %v3818_v0 = vshrl.u32 %v5448_v17, 16  ;;  %5978 = vmatprep.mubr.msk.bf16.mxu0 %vm335_vm1, %v6438_v59  ;;  %v5144_v54 = vcombine.low %v7570_v3, %v7581_v45  ;;  %v3800_v15 = vor.u32 %v3799_v56, %v3796_v48  ;;  %v1325_v56 = vld [vmem:[%s6656_s11 + $0xb4] sm:$0xe] }
  0xc4   : > { %v3805_v7 = vrot.slane %v3803_v44, 5  ;;  %v3821_v61 = vshll.u32 %v5448_v17, 16  ;;  %v3809_v30 = vrot.slane %v3807_v11, 4  ;;  %v3827_v2 = vshll.u32 %v7562_v51, 16  ;;  %v5451_v11 = vld [vmem:[%s6656_s11 + $0x48] sm:$0xf] }
  0xc5   : > { %v3815_v49 = vrot.slane %v3813_v5, 5  ;;  %v3820_v35 = vrot.slane %v3818_v0, 4  ;;  %v3801_v31 = vrot.slane %v3800_v15, 4  ;;  %v3831_v39 = vshrl.u32 %v7562_v51, 16 }
  0xc6   : > { %v3823_v41 = vrot.slane %v3821_v61, 5  ;;  %v3837_v59 = vshll.u32 %v7573_v43, 16  ;;  %v3810_v17 = vor.u32 %v3809_v30, %v3805_v7  ;;  %v3829_v8 = vrot.slane %v3827_v2, 5  ;;  %v7612_v61 = vld [vmem:[%s6656_s11 + $0x4c] sm:$0xf] }
  0xc7   : > { %5827 = vmatmul.mubr.msk.bf16.gmra.mrb[12].mxu1 %vm335_vm1, %v5138_v22  ;;  %v5128_v50 = vrot.slane %v1324_v58, 9  ;;  %v1477_v48 = vrot.slane %v7265_v52, 5  ;;  %v3806_v44 = vsel %vm6713_vm4, %v3801_v31, %v3805_v7  ;;  %v3833_v14 = vrot.slane %v3831_v39, 4 }
  0xc8   : > { %5830 = vmatprep.mubr.msk.bf16.mxu1 %vm335_vm1, %v5139_v33  ;;  %v3824_v32 = vor.u32 %v3823_v41, %v3820_v35  ;;  %v3839_v22 = vrot.slane %v3837_v59, 5  ;;  %v3811_v5 = vrot.slane %v3810_v17, 4  ;;  %v1480_v52 = vrot.slane %v7276_v38, 5  ;;  %v7634_v59 = vld [vmem:[%s6656_s11 + $0x58] sm:$0xf] }
  0xc9   : > { %v7608_v0 = vsel %vm6840_vm7, %v5128_v50, %v1477_v48  ;;  %v1479_v15 = vrot.slane %v1477_v48, 4  ;;  %v3834_v33 = vor.u32 %v3833_v14, %v3829_v8  ;;  %v5129_v7 = vrot.slane %v1325_v56, 9  ;;  %v7641_v48 = vld [vmem:[%s6656_s11 + $0x5c] sm:$0x1] }
  0xca   : > { %v3825_v13 = vrot.slane %v3824_v32, 4  ;;  %v1484_v58 = vrot.slane %v7285_v28, 5  ;;  %5979 = vmatmul.mubr.msk.bf16.gmra.mrb[28].mxu0 %vm335_vm1, %v6439_v53  ;;  %v3816_v30 = vsel %vm6713_vm4, %v3811_v5, %v3815_v49  ;;  %v1487_v35 = vrot.slane %v7298_v46, 5  ;;  %v5454_v49 = vld [vmem:[%s6656_s11 + $0x54] sm:$0xf] }
  0xcb   : > { %v7623_v38 = vsel %vm6840_vm7, %v1479_v15, %v1480_v52  ;;  %v3842_v2 = vshrl.u32 %v5451_v11, 16  ;;  %5984 = vmatprep.mubr.msk.bf16.mxu0 %vm335_vm1, %v7543_v60  ;;  %v5490_v31 = vcombine.low %v3806_v44, %v3816_v30  ;;  %v3835_v41 = vrot.slane %v3834_v33, 4  ;;  %v5457_v60 = vld [vmem:[%s6656_s11 + $0x60] sm:$0xf]  ;;  %v7668_v30 = vld [vmem:[%s6656_s11 + $0x68] sm:$0x1] }
  0xcc   : > { %v3830_v28 = vsel %vm6713_vm4, %v3825_v13, %v3829_v8  ;;  %v5145_v39 = vcombine.low %v7608_v0, %v7623_v38  ;;  %v7638_v53 = vsel %vm6840_vm7, %v5129_v7, %v1484_v58  ;;  %v1486_v46 = vrot.slane %v1484_v58, 4  ;;  %v7664_v13 = vld [vmem:[%s6656_s11 + $0x64] sm:$0xf] }
  0xcd   : > { %v3844_v17 = vrot.slane %v3842_v2, 4  ;;  %v3845_v50 = vshll.u32 %v5451_v11, 16  ;;  %v3840_v8 = vsel %vm6713_vm4, %v3835_v41, %v3839_v22  ;;  %v3851_v56 = vshll.u32 %v7612_v61, 16 }
  0xce   : > { %v3855_v44 = vshrl.u32 %v7612_v61, 16  ;;  %v3861_v32 = vshll.u32 %v7615_v55, 16  ;;  %v5491_v14 = vcombine.low %v3830_v28, %v3840_v8  ;;  %v7655_v11 = vsel %vm6840_vm7, %v1486_v46, %v1487_v35 }
  0xcf   : > { %5831 = vmatmul.mubr.msk.bf16.gmra.mrb[16].mxu1 %vm335_vm1, %v5140_v29  ;;  %v3847_v5 = vrot.slane %v3845_v50, 5  ;;  %v3866_v15 = vshrl.u32 %v5454_v49, 16  ;;  %v5146_v22 = vcombine.low %v7638_v53, %v7655_v11  ;;  %v3853_v52 = vrot.slane %v3851_v56, 5  ;;  %v7772_v11 = vld [vmem:[%s6656_s11 + $0xa4] sm:$0x1] }
  0xd0   : > { %5834 = vmatprep.mubr.msk.bf16.mxu1 %vm335_vm1, %v5141_v10  ;;  %v3857_v62 = vrot.slane %v3855_v44, 4  ;;  %v3863_v24 = vrot.slane %v3861_v32, 5  ;;  %v3869_v7 = vshll.u32 %v5454_v49, 16  ;;  %v3875_v58 = vshll.u32 %v7634_v59, 16 }
  0xd1   : > { %v3848_v29 = vor.u32 %v3847_v5, %v3844_v17  ;;  %v3868_v33 = vrot.slane %v3866_v15, 4  ;;  %v3879_v57 = vshrl.u32 %v7634_v59, 16  ;;  %v3885_v20 = vshll.u32 %v7641_v48, 16  ;;  %v5460_v5 = vld [vmem:[%s6656_s11 + $0x6c] sm:$0xf] }
  0xd2   : > { %v3858_v35 = vor.u32 %v3857_v62, %v3853_v52  ;;  %v3890_v10 = vshrl.u32 %v5457_v60, 16  ;;  %5985 = vmatmul.mubr.msk.bf16.vlgmr.msra.gmra.mrb[0].mxu0 %vm335_vm1, %v7575_v18  ;;  %v3871_v28 = vrot.slane %v3869_v7, 5  ;;  %v3877_v41 = vrot.slane %v3875_v58, 5  ;;  %v7685_v62 = vld [vmem:[%s6656_s11 + $0x70] sm:$0xf] }
  0xd3   : > { %v3849_v2 = vrot.slane %v3848_v29, 4  ;;  %v3893_v46 = vshll.u32 %v5457_v60, 16  ;;  %6017 = vmatpush3.bf16.msra.mxu0 %v7518_v27  ;;  %5988 = vmatprep.mubr.msk.bf16.mxu0 %vm335_vm1, %v5490_v31  ;;  %v3881_v17 = vrot.slane %v3879_v57, 4  ;;  %v3887_v50 = vrot.slane %v3885_v20, 5  ;;  %v7696_v57 = vld [vmem:[%s6656_s11 + $0x74] sm:$0x1] }
  0xd4   : > { %v3859_v49 = vrot.slane %v3858_v35, 4  ;;  %v3892_v8 = vrot.slane %v3890_v10, 4  ;;  %v3872_v44 = vor.u32 %v3871_v28, %v3868_v33  ;;  %v3899_v18 = vshll.u32 %v7664_v13, 16 }
  0xd5   : > { %v3854_v56 = vsel %vm6713_vm4, %v3849_v2, %v3853_v52  ;;  %v3895_v32 = vrot.slane %v3893_v46, 5  ;;  %v3882_v15 = vor.u32 %v3881_v17, %v3877_v41  ;;  %v3903_v27 = vshrl.u32 %v7664_v13, 16  ;;  %v5463_v2 = vld [vmem:[%s6656_s11 + $0x78] sm:$0xf]  ;;  %v7706_v46 = vld [vmem:[%s6656_s11 + $0x7c] sm:$0xf] }
  0xd6   : > { %v3864_v60 = vsel %vm6713_vm4, %v3859_v49, %v3863_v24  ;;  %v3909_v31 = vshll.u32 %v7668_v30, 16  ;;  %v3873_v29 = vrot.slane %v3872_v44, 4  ;;  %v3901_v7 = vrot.slane %v3899_v18, 5 }
  0xd7   : > { %5835 = vmatmul.mubr.msk.bf16.gmra.mrb[20].mxu1 %vm335_vm1, %v5142_v6  ;;  %v5492_v52 = vcombine.low %v3854_v56, %v3864_v60  ;;  %v3896_v33 = vor.u32 %v3895_v32, %v3892_v8  ;;  %v3883_v24 = vrot.slane %v3882_v15, 4  ;;  %v3905_v58 = vrot.slane %v3903_v27, 4  ;;  %v7714_v32 = vld [vmem:[%s6656_s11 + $0x80] sm:$0x1]  ;;  %v5466_v27 = vld [vmem:[%s6656_s11 + $0x84] sm:$0xf] }
  0xd8   : > { %5838 = vmatprep.mubr.msk.bf16.mxu1 %vm335_vm1, %v5143_v37  ;;  %v3911_v35 = vrot.slane %v3909_v31, 5  ;;  %v3914_v20 = vshrl.u32 %v5460_v5, 16  ;;  %v3878_v19 = vsel %vm6713_vm4, %v3873_v29, %v3877_v41  ;;  %v3917_v6 = vshll.u32 %v5460_v5, 16 }
  0xd9   : > { %v3897_v21 = vrot.slane %v3896_v33, 4  ;;  %v3923_v10 = vshll.u32 %v7685_v62, 16  ;;  %v3888_v23 = vsel %vm6713_vm4, %v3883_v24, %v3887_v50  ;;  %v3906_v16 = vor.u32 %v3905_v58, %v3901_v7 }
  0xda   : > { %v3916_v37 = vrot.slane %v3914_v20, 4  ;;  %v3927_v28 = vshrl.u32 %v7685_v62, 16  ;;  %5989 = vmatmul.mubr.msk.bf16.gmra.mrb[4].mxu0 %vm335_vm1, %v5491_v14  ;;  %v5493_v49 = vcombine.low %v3878_v19, %v3888_v23  ;;  %v3919_v17 = vrot.slane %v3917_v6, 5 }
  0xdb   : > { %v3902_v41 = vsel %vm6713_vm4, %v3897_v21, %v3901_v7  ;;  %v3925_v8 = vrot.slane %v3923_v10, 5  ;;  %5992 = vmatprep.mubr.msk.bf16.mxu0 %vm335_vm1, %v5492_v52  ;;  %v3907_v56 = vrot.slane %v3906_v16, 4  ;;  %v3933_v44 = vshll.u32 %v7696_v57, 16  ;;  %v7722_v7 = vld [vmem:[%s6656_s11 + $0x88] sm:$0xf] }
  0xdc   : > { %v3929_v50 = vrot.slane %v3927_v28, 4  ;;  %v3938_v18 = vshrl.u32 %v5463_v2, 16  ;;  %v3920_v5 = vor.u32 %v3919_v17, %v3916_v37  ;;  %v3941_v60 = vshll.u32 %v5463_v2, 16  ;;  %v5469_v16 = vld [vmem:[%s6656_s11 + $0x90] sm:$0xf] }
  0xdd   : > { %v3947_v14 = vshll.u32 %v7706_v46, 16  ;;  %v3951_v15 = vshrl.u32 %v7706_v46, 16  ;;  %v3912_v31 = vsel %vm6713_vm4, %v3907_v56, %v3911_v35  ;;  %v3935_v52 = vrot.slane %v3933_v44, 5  ;;  %v7743_v28 = vld [vmem:[%s6656_s11 + $0x94] sm:$0xf] }
  0xde   : > { %v3930_v29 = vor.u32 %v3929_v50, %v3925_v8  ;;  %v3940_v33 = vrot.slane %v3938_v18, 4  ;;  %v5494_v24 = vcombine.low %v3902_v41, %v3912_v31  ;;  %v3921_v58 = vrot.slane %v3920_v5, 4  ;;  %v6440_v50 = vld [vmem:[%s6656_s11 + $0xc] sm:$0xff]  }
  0xdf   : > { %5839 = vmatmul.mubr.msk.bf16.gmra.mrb[24].mxu1 %vm335_vm1, %v5144_v54  ;;  %v3943_v20 = vrot.slane %v3941_v60, 5  ;;  %v3949_v19 = vrot.slane %v3947_v14, 5  ;;  %v3953_v21 = vrot.slane %v3951_v15, 4  ;;  %v3957_v6 = vshll.u32 %v7714_v32, 16  ;;  %v7736_v54 = vld [vmem:[%s6656_s11 + $0x8c] sm:$0x1] }
  0xe0   : > { %5842 = vmatprep.mubr.msk.bf16.mxu1 %vm335_vm1, %v5145_v39  ;;  %v3931_v35 = vrot.slane %v3930_v29, 4  ;;  %v3962_v10 = vshrl.u32 %v5466_v27, 16  ;;  %v3926_v3 = vsel %vm6713_vm4, %v3921_v58, %v3925_v8  ;;  %v3965_v2 = vshll.u32 %v5466_v27, 16  ;;  %v5472_v29 = vld [vmem:[%s6656_s11 + $0x9c] sm:$0xf] }
  0xe1   : > { %v3944_v45 = vor.u32 %v3943_v20, %v3940_v33  ;;  %v3971_v23 = vshll.u32 %v7722_v7, 16  ;;  %v3954_v38 = vor.u32 %v3953_v21, %v3949_v19  ;;  %v3959_v39 = vrot.slane %v3957_v6, 5  ;;  %v7760_v20 = vld [vmem:[%s6656_s11 + $0xa0] sm:$0xf] }
  0xe2   : > { %v3936_v0 = vsel %vm6713_vm4, %v3931_v35, %v3935_v52  ;;  %v3964_v37 = vrot.slane %v3962_v10, 4  ;;  %5993 = vmatmul.mubr.msk.bf16.gmra.mrb[8].mxu0 %vm335_vm1, %v5493_v49  ;;  %v3967_v8 = vrot.slane %v3965_v2, 5  ;;  %v3975_v18 = vshrl.u32 %v7722_v7, 16  ;;  %v7753_v49 = vld [vmem:[%s6656_s11 + $0x98] sm:$0x1] }
  0xe3   : > { %v5495_v41 = vcombine.low %v3926_v3, %v3936_v0  ;;  %v3945_v17 = vrot.slane %v3944_v45, 4  ;;  %v3973_v56 = vrot.slane %v3971_v23, 5  ;;  %5996 = vmatprep.mubr.msk.bf16.mxu0 %vm335_vm1, %v5494_v24  ;;  %v3955_v44 = vrot.slane %v3954_v38, 4  ;;  %v5475_v0 = vld [vmem:[%s6656_s11 + $0xa8] sm:$0xf] }
  0xe4   : > { %v3981_v5 = vshll.u32 %v7736_v54, 16  ;;  %v3986_v60 = vshrl.u32 %v5469_v16, 16  ;;  %v3968_v15 = vor.u32 %v3967_v8, %v3964_v37  ;;  %v3989_v27 = vshll.u32 %v5469_v16, 16  ;;  %v6441_v8 = vld [vmem:[%s6656_s11 + $0x18] sm:$0xff]  }
  0xe5   : > { %v3950_v14 = vsel %vm6713_vm4, %v3945_v17, %v3949_v19  ;;  %v3995_v31 = vshll.u32 %v7743_v28, 16  ;;  %v3960_v52 = vsel %vm6713_vm4, %v3955_v44, %v3959_v39  ;;  %v3977_v33 = vrot.slane %v3975_v18, 4 }
  0xe6   : > { %v3983_v24 = vrot.slane %v3981_v5, 5  ;;  %v3988_v58 = vrot.slane %v3986_v60, 4  ;;  %v5496_v19 = vcombine.low %v3950_v14, %v3960_v52  ;;  %v3969_v35 = vrot.slane %v3968_v15, 4  ;;  %v6442_v5 = vld [vmem:[%s6656_s11 + $0x24] sm:$0xff]  }
  0xe7   : > { %5843 = vmatmul.mubr.msk.bf16.gmra.mrb[28].mxu1 %vm335_vm1, %v5146_v22  ;;  %v3991_v21 = vrot.slane %v3989_v27, 5  ;;  %v3997_v6 = vrot.slane %v3995_v31, 5  ;;  %v3978_v10 = vor.u32 %v3977_v33, %v3973_v56  ;;  %v3999_v3 = vshrl.u32 %v7743_v28, 16  ;;  %v7785_v27 = vld [vmem:[%s6656_s11 + $0xac] sm:$0xf] }
  0xe8   : > { %5848 = vmatprep.mubr.msk.bf16.mxu1 %vm335_vm1, %v6440_v50  ;;  %v4005_v45 = vshll.u32 %v7753_v49, 16  ;;  %v4010_v2 = vshrl.u32 %v5472_v29, 16  ;;  %v3974_v23 = vsel %vm6713_vm4, %v3969_v35, %v3973_v56  ;;  %v4013_v22 = vshll.u32 %v5472_v29, 16  ;;  %v5478_v35 = vld [vmem:[%s6656_s11 + $0xb4] sm:$0xf] }
  0xe9   : > { %v3992_v53 = vor.u32 %v3991_v21, %v3988_v58  ;;  %v4019_v16 = vshll.u32 %v7760_v20, 16  ;;  %v3979_v38 = vrot.slane %v3978_v10, 4  ;;  %v4001_v39 = vrot.slane %v3999_v3, 4  ;;  %v7790_v58 = vld [vmem:[%s6656_s11 + $0xb0] sm:$0x1] }
  0xea   : > { %v4007_v37 = vrot.slane %v4005_v45, 5  ;;  %v4012_v17 = vrot.slane %v4010_v2, 4  ;;  %5997 = vmatmul.mubr.msk.bf16.gmra.mrb[12].mxu0 %vm335_vm1, %v5495_v41  ;;  %v4015_v56 = vrot.slane %v4013_v22, 5  ;;  %v4023_v18 = vshrl.u32 %v7760_v20, 16 }
  0xeb   : > { %v3993_v50 = vrot.slane %v3992_v53, 4  ;;  %v4021_v44 = vrot.slane %v4019_v16, 5  ;;  %6000 = vmatprep.mubr.msk.bf16.mxu0 %vm335_vm1, %v5496_v19  ;;  %v3984_v60 = vsel %vm6713_vm4, %v3979_v38, %v3983_v24  ;;  %v4002_v14 = vor.u32 %v4001_v39, %v3997_v6  ;;  %v7802_v16 = vld [vmem:[%s6656_s11 + $0xb8] sm:$0xf] }
  0xec   : > { %v4029_v15 = vshll.u32 %v7772_v11, 16  ;;  %v4034_v31 = vshrl.u32 %v5475_v0, 16  ;;  %v5497_v41 = vcombine.low %v3974_v23, %v3984_v60  ;;  %v4016_v52 = vor.u32 %v4015_v56, %v4012_v17  ;;  %v6443_v60 = vld [vmem:[%s6656_s11 + $0x30] sm:$0xff]  }
  0xed   : > { %v3998_v29 = vsel %vm6713_vm4, %v3993_v50, %v3997_v6  ;;  %v4025_v33 = vrot.slane %v4023_v18, 4  ;;  %v4003_v19 = vrot.slane %v4002_v14, 4  ;;  %v4037_v24 = vshll.u32 %v5475_v0, 16  ;;  %v7807_v50 = vld [vmem:[%s6656_s11 + $0xbc] sm:$0x1] }
  0xee   : > { %v4031_v21 = vrot.slane %v4029_v15, 5  ;;  %v4036_v10 = vrot.slane %v4034_v31, 4  ;;  %v4017_v3 = vrot.slane %v4016_v52, 4  ;;  %v4043_v2 = vshll.u32 %v7785_v27, 16 }
  0xef   : > { %5849 = vmatmul.mubr.msk.bf16.vlgmr.msra.gmra.mrb[0].mxu1 %vm335_vm1, %v6441_v8  ;;  %v4026_v45 = vor.u32 %v4025_v33, %v4021_v44  ;;  %v4047_v23 = vshrl.u32 %v7785_v27, 16  ;;  %v4008_v6 = vsel %vm6713_vm4, %v4003_v19, %v4007_v37  ;;  %v4039_v53 = vrot.slane %v4037_v24, 5  ;;  %v7820_v24 = vld [vmem:[%s6656_s11 + $0xc4] sm:$0xf] }
  0xf0   : > { %5852 = vmatprep.mubr.msk.bf16.mxu1 %vm335_vm1, %v6442_v5  ;;  %6051 = vmatpush3.bf16.msra.mxu1 %v6645_v4  ;;  %v4053_v22 = vshll.u32 %v7790_v58, 16  ;;  %v4058_v0 = vshrl.u32 %v5478_v35, 16  ;;  %v5498_v38 = vcombine.low %v3998_v29, %v4008_v6  ;;  %v4022_v39 = vsel %vm6713_vm4, %v4017_v3, %v4021_v44  ;;  %v5481_v5 = vld [vmem:[%s6656_s11 + $0xc0] sm:$0xf] }
  0xf1   : > { %v4027_v17 = vrot.slane %v4026_v45, 4  ;;  %v4045_v8 = vrot.slane %v4043_v2, 5  ;;  %v4040_v4 = vor.u32 %v4039_v53, %v4036_v10  ;;  %v4049_v56 = vrot.slane %v4047_v23, 4  ;;  %v6444_v29 = vld [vmem:[%s6656_s11 + $0x3c] sm:$0xff]  }
  0xf2   : > { %v4055_v18 = vrot.slane %v4053_v22, 5  ;;  %v4060_v37 = vrot.slane %v4058_v0, 4  ;;  %6001 = vmatmul.mubr.msk.bf16.gmra.mrb[16].mxu0 %vm335_vm1, %v5497_v41  ;;  %v4061_v15 = vshll.u32 %v5478_v35, 16  ;;  %v4067_v44 = vshll.u32 %v7802_v16, 16 }
  0xf3   : > { %v4032_v14 = vsel %vm6713_vm4, %v4027_v17, %v4031_v21  ;;  %v4071_v31 = vshrl.u32 %v7802_v16, 16  ;;  %6004 = vmatprep.mubr.msk.bf16.mxu0 %vm335_vm1, %v5498_v38  ;;  %v4041_v33 = vrot.slane %v4040_v4, 4  ;;  %v4050_v19 = vor.u32 %v4049_v56, %v4045_v8  ;;  %v7823_v21 = vld [vmem:[%s6656_s11 + $0xc8] sm:$0x1]  ;;  %v5484_v17 = vld [vmem:[%s6656_s11 + $0xcc] sm:$0xf] }
  0xf4   : > { %v5499_v52 = vcombine.low %v4022_v39, %v4032_v14  ;;  %v4077_v10 = vshll.u32 %v7807_v50, 16  ;;  %v4063_v41 = vrot.slane %v4061_v15, 5  ;;  %v4069_v3 = vrot.slane %v4067_v44, 5  ;;  %v7836_v14 = vld [vmem:[%s6656_s11 + $0xd0] sm:$0xf] }
  0xf5   : > { %v4073_v45 = vrot.slane %v4071_v31, 4  ;;  %v4082_v35 = vshrl.u32 %v5481_v5, 16  ;;  %v4046_v2 = vsel %vm6713_vm4, %v4041_v33, %v4045_v8  ;;  %v4051_v23 = vrot.slane %v4050_v19, 4 }
  0xf6   : > { %v4079_v6 = vrot.slane %v4077_v10, 5  ;;  %v4085_v53 = vshll.u32 %v5481_v5, 16  ;;  %v4064_v22 = vor.u32 %v4063_v41, %v4060_v37  ;;  %v4091_v39 = vshll.u32 %v7820_v24, 16 }
  0xf7   : > { %5853 = vmatmul.mubr.msk.bf16.gmra.mrb[4].mxu1 %vm335_vm1, %v6443_v60  ;;  %v4074_v0 = vor.u32 %v4073_v45, %v4069_v3  ;;  %v4084_v38 = vrot.slane %v4082_v35, 4  ;;  %v4056_v4 = vsel %vm6713_vm4, %v4051_v23, %v4055_v18  ;;  %v4095_v8 = vshrl.u32 %v7820_v24, 16  ;;  %v6445_v18 = vld [vmem:[%s6656_s11 + $0x48] sm:$0xff]   ;;  %v5520_v23 = vld [vmem:[%s6656_s11 + $0x18] sm:$0xe] }
  0xf8   : > { %5856 = vmatprep.mubr.msk.bf16.mxu1 %vm335_vm1, %v6444_v29  ;;  %v4087_v56 = vrot.slane %v4085_v53, 5  ;;  %v4101_v5 = vshll.u32 %v7823_v21, 16  ;;  %v5500_v37 = vcombine.low %v4046_v2, %v4056_v4  ;;  %v4065_v60 = vrot.slane %v4064_v22, 4  ;;  %v7839_v29 = vld [vmem:[%s6656_s11 + $0xd4] sm:$0x1] }
  0xf9   : > { %v4075_v15 = vrot.slane %v4074_v0, 4  ;;  %v4093_v44 = vrot.slane %v4091_v39, 5  ;;  %v4097_v33 = vrot.slane %v4095_v8, 4  ;;  %v4106_v10 = vshrl.u32 %v5484_v17, 16  ;;  %v6446_v53 = vld [vmem:[%s6656_s11 + $0x54] sm:$0xff]  }
  0xfa   : > { %v4088_v31 = vor.u32 %v4087_v56, %v4084_v38  ;;  %v4103_v19 = vrot.slane %v4101_v5, 5  ;;  %6005 = vmatmul.mubr.msk.bf16.gmra.mrb[20].mxu0 %vm335_vm1, %v5499_v52  ;;  %v4070_v41 = vsel %vm6713_vm4, %v4065_v60, %v4069_v3  ;;  %v4109_v35 = vshll.u32 %v5484_v17, 16  ;;  %v5521_v8 = vld [vmem:[%s6656_s11 + $0x24] sm:$0xe] }
  0xfb   : > { %v4080_v45 = vsel %vm6713_vm4, %v4075_v15, %v4079_v6  ;;  %v4115_v2 = vshll.u32 %v7836_v14, 16  ;;  %6008 = vmatprep.mubr.msk.bf16.mxu0 %vm335_vm1, %v5500_v37  ;;  %v4098_v38 = vor.u32 %v4097_v33, %v4093_v44  ;;  %v4108_v39 = vrot.slane %v4106_v10, 4  ;;  %v5522_v10 = vld [vmem:[%s6656_s11 + $0x30] sm:$0xe] }
  0xfc   : > { %v5501_v22 = vcombine.low %v4070_v41, %v4080_v45  ;;  %v4089_v0 = vrot.slane %v4088_v31, 4  ;;  %v4111_v52 = vrot.slane %v4109_v35, 5  ;;  %v4119_v56 = vshrl.u32 %v7836_v14, 16 }
  0xfd   : > { %v4117_v4 = vrot.slane %v4115_v2, 5  ;;  %v4125_v3 = vshll.u32 %v7839_v29, 16  ;;  %v4099_v17 = vrot.slane %v4098_v38, 4  ;;  %v5536_v5 = vrot.slane %v5520_v23, 9 }
  0xfe   : > { %v4094_v6 = vsel %vm6713_vm4, %v4089_v0, %v4093_v44  ;;  %v4489_v60 = vrot.slane %v7446_v9, 5  ;;  %v4112_v37 = vor.u32 %v4111_v52, %v4108_v39  ;;  %v4121_v15 = vrot.slane %v4119_v56, 4  ;;  %v5523_v39 = vld [vmem:[%s6656_s11 + $0x3c] sm:$0xe] }
  0xff   : > { %5857 = vmatmul.mubr.msk.bf16.gmra.mrb[8].mxu1 %vm335_vm1, %v6445_v18  ;;  %v4127_v31 = vrot.slane %v4125_v3, 5  ;;  %v4492_v33 = vrot.slane %v7459_v36, 5  ;;  %v4104_v41 = vsel %vm6713_vm4, %v4099_v17, %v4103_v19  ;;  %v5537_v9 = vrot.slane %v5521_v8, 9  ;;  %v6447_v3 = vld [vmem:[%s6656_s11 + $0x60] sm:$0xff]   ;;  %v5524_v8 = vld [vmem:[%s6656_s11 + $0x48] sm:$0xe] }
 0x100   : > { %5860 = vmatprep.mubr.msk.bf16.mxu1 %vm335_vm1, %v6446_v53  ;;  %v4490_v44 = vsel %vm6840_vm7, %v5536_v5, %v4489_v60  ;;  %v4491_v45 = vrot.slane %v4489_v60, 4  ;;  %v5502_v18 = vcombine.low %v4094_v6, %v4104_v41  ;;  %v4113_v35 = vrot.slane %v4112_v37, 4  ;;  %v6448_v6 = vld [vmem:[%s6656_s11 + $0x6c] sm:$0xff]  }
 0x101   : > { %v4122_v2 = vor.u32 %v4121_v15, %v4117_v4  ;;  %v4496_v23 = vrot.slane %v7495_v40, 5  ;;  %v8336_v36 = vshll.u32 %v7033_v12, 16  ;;  %v5538_v19 = vrot.slane %v5522_v10, 9  ;;  %v5525_v15 = vld [vmem:[%s6656_s11 + $0x54] sm:$0xe] }
 0x102   : > { %v4493_v53 = vsel %vm6840_vm7, %v4491_v45, %v4492_v33  ;;  %v4503_v38 = vrot.slane %v7536_v34, 5  ;;  %v8337_v52 = vor.u32 %v7045_v1, %v7035_v63  ;;  %6009 = vmatmul.mubr.msk.bf16.gmra.mrb[24].mxu0 %vm335_vm1, %v5501_v22  ;;  %v4499_v12 = vrot.slane %v7498_v26, 5 }
 0x103   : > { %v7868_v0 = vrot.slane %v8336_v36, 5  ;;  %v4123_v40 = vrot.slane %v4122_v2, 4  ;;  %6012 = vmatprep.mubr.msk.bf16.mxu0 %vm335_vm1, %v5502_v18  ;;  %v4118_v34 = vsel %vm6713_vm4, %v4113_v35, %v4117_v4  ;;  %v5553_v17 = vcombine.low %v4490_v44, %v4493_v53  ;;  %v5252_v44 = vld [vmem:[%s6656_s11 + $0x6c] sm:$0xf] }
 0x104   : > { %v7877_v56 = vrot.slane %v8337_v52, 4  ;;  %v7889_v1 = vsel %vm6840_vm7, %v5537_v9, %v4496_v23  ;;  %v4498_v5 = vrot.slane %v4496_v23, 4  ;;  %v5539_v60 = vrot.slane %v5523_v39, 9  ;;  %v6449_v39 = vld [vmem:[%s6656_s11 + $0x78] sm:$0xff]  }
 0x105   : > { %v4128_v22 = vsel %vm6713_vm4, %v4123_v40, %v4127_v31  ;;  %v4510_v26 = vrot.slane %v7562_v51, 5  ;;  %v4513_v37 = vrot.slane %v7573_v43, 5  ;;  %v7898_v33 = vsel %vm6840_vm7, %v5538_v19, %v4503_v38  ;;  %v5255_v19 = vld [vmem:[%s6656_s11 + $0x78] sm:$0xf]  ;;  %v6458_v40 = vld [vmem:[%s6656_s11 + $0x70] sm:$0xf] }
 0x106   : > { %v4505_v4 = vrot.slane %v4503_v38, 4  ;;  %v4506_v10 = vrot.slane %v7548_v25, 5  ;;  %v5540_v41 = vrot.slane %v5524_v8, 9  ;;  %v5503_v45 = vcombine.low %v4118_v34, %v4128_v22  ;;  %v6450_v8 = vld [vmem:[%s6656_s11 + $0x84] sm:$0xff]  }
 0x107   : > { %5861 = vmatmul.mubr.msk.bf16.gmra.mrb[12].mxu1 %vm335_vm1, %v6447_v3  ;;  %v4500_v31 = vsel %vm6840_vm7, %v4498_v5, %v4499_v12  ;;  %v7907_v51 = vsel %vm6840_vm7, %v5539_v60, %v4510_v26  ;;  %v4512_v43 = vrot.slane %v4510_v26, 4  ;;  %v4517_v9 = vrot.slane %v7612_v61, 5  ;;  %v5526_v60 = vld [vmem:[%s6656_s11 + $0x60] sm:$0xe] }
 0x108   : > { %5864 = vmatprep.mubr.msk.bf16.mxu1 %vm335_vm1, %v6448_v6  ;;  %v4520_v25 = vrot.slane %v7615_v55, 5  ;;  %v5541_v18 = vrot.slane %v5525_v15, 9  ;;  %v4524_v35 = vrot.slane %v7634_v59, 5  ;;  %v4527_v23 = vrot.slane %v7641_v48, 5 }
 0x109   : > { %v7915_v2 = vsel %vm6840_vm7, %v4512_v43, %v4513_v37  ;;  %v2383_v36 = vshrl.u32 %v5252_v44, 16  ;;  %v2386_v53 = vshll.u32 %v5252_v44, 16  ;;  %v4507_v38 = vsel %vm6840_vm7, %v4505_v4, %v4506_v10 }
 0x10a   : > { %v5556_v61 = vcombine.low %v7907_v51, %v7915_v2  ;;  %v7925_v55 = vsel %vm6840_vm7, %v5540_v41, %v4517_v9  ;;  %v4519_v59 = vrot.slane %v4517_v9, 4  ;;  %6013 = vmatmul.mubr.msk.bf16.gmra.mrb[28].mxu0 %vm335_vm1, %v5503_v45  ;;  %v7931_v48 = vsel %vm6840_vm7, %v5541_v18, %v4524_v35  ;;  %v6459_v45 = vld [vmem:[%s6656_s11 + $0x74] sm:$0x1] }
 0x10b   : > { %v4526_v52 = vrot.slane %v4524_v35, 4  ;;  %v2385_v3 = vrot.slane %v2383_v36, 4  ;;  %v2392_v12 = vshll.u32 %v6458_v40, 16  ;;  %6018 = vmatprep.mubr.msk.bf16.mxu0 %vm335_vm1, %v5553_v17  ;;  %v2388_v34 = vrot.slane %v2386_v53, 5  ;;  %v5527_v17 = vld [vmem:[%s6656_s11 + $0x6c] sm:$0xe] }
 0x10c   : > { %v7938_v6 = vsel %vm6840_vm7, %v4519_v59, %v4520_v25  ;;  %v2396_v5 = vshrl.u32 %v6458_v40, 16  ;;  %v2407_v22 = vshrl.u32 %v5255_v19, 16  ;;  %v5554_v26 = vcombine.low %v7889_v1, %v4500_v31  ;;  %v5258_v25 = vld [vmem:[%s6656_s11 + $0x84] sm:$0xf] }
 0x10d   : > { %v5555_v37 = vcombine.low %v7898_v33, %v4507_v38  ;;  %v5557_v15 = vcombine.low %v7925_v55, %v7938_v6  ;;  %v7947_v4 = vsel %vm6840_vm7, %v4526_v52, %v4527_v23  ;;  %v7952_v41 = vrot.slane %v2392_v12, 5 }
 0x10e   : > { %v5558_v10 = vcombine.low %v7931_v48, %v7947_v4  ;;  %v2398_v44 = vrot.slane %v2396_v5, 4  ;;  %v2402_v43 = vshll.u32 %v6459_v45, 16  ;;  %v2409_v1 = vrot.slane %v2407_v22, 4  ;;  %v5261_v22 = vld [vmem:[%s6656_s11 + $0x90] sm:$0xf] }
 0x10f   : > { %5865 = vmatmul.mubr.msk.bf16.gmra.mrb[16].mxu1 %vm335_vm1, %v6449_v39  ;;  %v2410_v33 = vshll.u32 %v5255_v19, 16  ;;  %v2429_v31 = vsel %vm6713_vm4, %v7877_v56, %v7868_v0  ;;  %v5542_v9 = vrot.slane %v5526_v60, 9  ;;  %v2389_v18 = vor.u32 %v2388_v34, %v2385_v3  ;;  %v6452_v3 = vld [vmem:[%s6656_s11 + $0x9c] sm:$0xff]   ;;  %v6460_v34 = vld [vmem:[%s6656_s11 + $0x88] sm:$0xf] }
 0x110   : > { %5868 = vmatprep.mubr.msk.bf16.mxu1 %vm335_vm1, %v6450_v8  ;;  %v4531_v35 = vrot.slane %v7664_v13, 5  ;;  %v4534_v23 = vrot.slane %v7668_v30, 5  ;;  %v5543_v36 = vrot.slane %v5527_v17, 9  ;;  %v4538_v19 = vrot.slane %v7685_v62, 5  ;;  %v6451_v13 = vld [vmem:[%s6656_s11 + $0x90] sm:$0xff]  }
 0x111   : > { %v2412_v53 = vrot.slane %v2410_v33, 5  ;;  %v4541_v38 = vrot.slane %v7696_v57, 5  ;;  %v2399_v59 = vor.u32 %v2398_v44, %v7952_v41  ;;  %v2431_v39 = vshrl.u32 %v5258_v25, 16 }
 0x112   : > { %v7969_v0 = vsel %vm6840_vm7, %v5542_v9, %v4531_v35  ;;  %v4533_v56 = vrot.slane %v4531_v35, 4  ;;  %6019 = vmatmul.mubr.msk.bf16.vlgmr.msra.gmra.mrb[0].mxu0 %vm335_vm1, %v5554_v26  ;;  %v7975_v52 = vsel %vm6840_vm7, %v5543_v36, %v4538_v19  ;;  %v4540_v62 = vrot.slane %v4538_v19, 4  ;;  %v6461_v36 = vld [vmem:[%s6656_s11 + $0x8c] sm:$0x1]  ;;  %v6462_v19 = vld [vmem:[%s6656_s11 + $0x94] sm:$0xf] }
 0x113   : > { %v2413_v30 = vor.u32 %v2412_v53, %v2409_v1  ;;  %v2434_v57 = vshll.u32 %v5258_v25, 16  ;;  %6022 = vmatprep.mubr.msk.bf16.mxu0 %vm335_vm1, %v5555_v37  ;;  %v7979_v40 = vrot.slane %v2389_v18, 4  ;;  %v7981_v12 = vrot.slane %v2402_v43, 5 }
 0x114   : > { %v7985_v8 = vsel %vm6840_vm7, %v4533_v56, %v4534_v23  ;;  %v2440_v5 = vshll.u32 %v6460_v34, 16  ;;  %v7993_v17 = vsel %vm6840_vm7, %v4540_v62, %v4541_v38  ;;  %v2433_v37 = vrot.slane %v2431_v39, 4  ;;  %v5528_v56 = vld [vmem:[%s6656_s11 + $0x78] sm:$0xe] }
 0x115   : > { %v2414_v60 = vrot.slane %v2413_v30, 4  ;;  %v5559_v26 = vcombine.low %v7969_v0, %v7985_v8  ;;  %v5560_v44 = vcombine.low %v7975_v52, %v7993_v17  ;;  %v2436_v45 = vrot.slane %v2434_v57, 5  ;;  %v6463_v57 = vld [vmem:[%s6656_s11 + $0x98] sm:$0x1]  ;;  %v6466_v0 = vld [vmem:[%s6656_s11 + $0xa4] sm:$0x1] }
 0x116   : > { %v7997_v43 = vrot.slane %v2440_v5, 5  ;;  %v2444_v1 = vshrl.u32 %v6460_v34, 16  ;;  %v2400_v33 = vrot.slane %v2399_v59, 4  ;;  %v2455_v25 = vshrl.u32 %v5261_v22, 16 }
 0x117   : > { %5869 = vmatmul.mubr.msk.bf16.gmra.mrb[20].mxu1 %vm335_vm1, %v6451_v13  ;;  %v2419_v9 = vsel %vm6713_vm4, %v2414_v60, %v7035_v63  ;;  %v2458_v18 = vshll.u32 %v5261_v22, 16  ;;  %v2450_v53 = vshll.u32 %v6461_v36, 16  ;;  %v2464_v38 = vshll.u32 %v6462_v19, 16 }
 0x118   : > { %5872 = vmatprep.mubr.msk.bf16.mxu1 %vm335_vm1, %v6452_v3  ;;  %v8004_v35 = vcombine.low %v2419_v9, %v2429_v31  ;;  %v2446_v23 = vrot.slane %v2444_v1, 4  ;;  %v2437_v59 = vor.u32 %v2436_v45, %v2433_v37  ;;  %v2457_v39 = vrot.slane %v2455_v25, 4  ;;  %v6453_v31 = vld [vmem:[%s6656_s11 + $0xa8] sm:$0xff]   ;;  %v5529_v37 = vld [vmem:[%s6656_s11 + $0x84] sm:$0xe]  ;;  %v6454_v45 = vld [vmem:[%s6656_s11 + $0xb4] sm:$0xff]  }
 0x119   : > { %v2460_v13 = vrot.slane %v2458_v18, 5  ;;  %v2468_v63 = vshrl.u32 %v6462_v19, 16  ;;  %v8010_v62 = vrot.slane %v2464_v38, 5  ;;  %v2474_v3 = vshll.u32 %v6463_v57, 16 }
 0x11a   : > { %v2447_v30 = vor.u32 %v2446_v23, %v7997_v43  ;;  %6023 = vmatmul.mubr.msk.bf16.gmra.mrb[4].mxu0 %vm335_vm1, %v5556_v61  ;;  %v5544_v22 = vrot.slane %v5528_v56, 9  ;;  %v4545_v60 = vrot.slane %v7706_v46, 5  ;;  %v2395_v51 = vsel %vm6713_vm4, %v7979_v40, %v7952_v41  ;;  %v6464_v56 = vld [vmem:[%s6656_s11 + $0xa0] sm:$0xf] }
 0x11b   : > { %v2461_v34 = vor.u32 %v2460_v13, %v2457_v39  ;;  %v2470_v5 = vrot.slane %v2468_v63, 4  ;;  %6026 = vmatprep.mubr.msk.bf16.mxu0 %vm335_vm1, %v5557_v15  ;;  %v2405_v2 = vsel %vm6713_vm4, %v2400_v33, %v7981_v12  ;;  %v2452_v61 = vrot.slane %v2450_v53, 5  ;;  %v5264_v15 = vld [vmem:[%s6656_s11 + $0x9c] sm:$0xf]  ;;  %v5267_v13 = vld [vmem:[%s6656_s11 + $0xa8] sm:$0xf] }
 0x11c   : > { %v4548_v1 = vrot.slane %v7714_v32, 5  ;;  %v2438_v46 = vrot.slane %v2437_v59, 4  ;;  %v8036_v55 = vsel %vm6840_vm7, %v5544_v22, %v4545_v60  ;;  %v4547_v6 = vrot.slane %v4545_v60, 4 }
 0x11d   : > { %v2471_v9 = vor.u32 %v2470_v5, %v8010_v62  ;;  %v2448_v25 = vrot.slane %v2447_v30, 4  ;;  %v5545_v18 = vrot.slane %v5529_v37, 9  ;;  %v4552_v41 = vrot.slane %v7722_v7, 5  ;;  %v5530_v37 = vld [vmem:[%s6656_s11 + $0x90] sm:$0xe] }
 0x11e   : > { %v4555_v40 = vrot.slane %v7736_v54, 5  ;;  %v2462_v32 = vrot.slane %v2461_v34, 4  ;;  %v2476_v33 = vrot.slane %v2474_v3, 5  ;;  %v8044_v23 = vsel %vm6840_vm7, %v4547_v6, %v4548_v1  ;;  %v5531_v1 = vld [vmem:[%s6656_s11 + $0x9c] sm:$0xe] }
 0x11f   : > { %5873 = vmatmul.mubr.msk.bf16.gmra.mrb[24].mxu1 %vm335_vm1, %v6453_v31  ;;  %v2472_v12 = vrot.slane %v2471_v9, 4  ;;  %v5561_v36 = vcombine.low %v8036_v55, %v8044_v23  ;;  %v8051_v7 = vsel %vm6840_vm7, %v5545_v18, %v4552_v41  ;;  %v4554_v54 = vrot.slane %v4552_v41, 4  ;;  %v6455_v31 = vld [vmem:[%s6656_s11 + $0xc0] sm:$0xff]  }
 0x120   : > { %5876 = vmatprep.mubr.msk.bf16.mxu1 %vm335_vm1, %v6454_v45  ;;  %v2479_v53 = vshrl.u32 %v5264_v15, 16  ;;  %v5285_v19 = vcombine.low %v2395_v51, %v2405_v2  ;;  %v2482_v38 = vshll.u32 %v5264_v15, 16  ;;  %v2488_v59 = vshll.u32 %v6464_v56, 16  ;;  %v6465_v51 = vld [vmem:[%s6656_s11 + $0xac] sm:$0xf] }
 0x121   : > { %v2492_v39 = vshrl.u32 %v6464_v56, 16  ;;  %v2443_v63 = vsel %vm6713_vm4, %v2438_v46, %v7997_v43  ;;  %v2453_v30 = vsel %vm6713_vm4, %v2448_v25, %v2452_v61  ;;  %v8062_v57 = vsel %vm6840_vm7, %v4554_v54, %v4555_v40  ;;  %v5270_v54 = vld [vmem:[%s6656_s11 + $0xb4] sm:$0xf] }
 0x122   : > { %v2481_v3 = vrot.slane %v2479_v53, 4  ;;  %6027 = vmatmul.mubr.msk.bf16.gmra.mrb[8].mxu0 %vm335_vm1, %v5558_v10  ;;  %v5562_v34 = vcombine.low %v8051_v7, %v8062_v57  ;;  %v2484_v43 = vrot.slane %v2482_v38, 5  ;;  %v8071_v5 = vrot.slane %v2488_v59, 5 }
 0x123   : > { %v2494_v22 = vrot.slane %v2492_v39, 4  ;;  %6030 = vmatprep.mubr.msk.bf16.mxu0 %vm335_vm1, %v5559_v26  ;;  %v2467_v48 = vsel %vm6713_vm4, %v2462_v32, %v8010_v62  ;;  %v2477_v4 = vsel %vm6713_vm4, %v2472_v12, %v2476_v33  ;;  %v2503_v10 = vshrl.u32 %v5267_v13, 16  ;;  %v6467_v26 = vld [vmem:[%s6656_s11 + $0xb0] sm:$0x1] }
 0x124   : > { %v2506_v60 = vshll.u32 %v5267_v13, 16  ;;  %v2485_v45 = vor.u32 %v2484_v43, %v2481_v3  ;;  %v2512_v2 = vshll.u32 %v6465_v51, 16  ;;  %v2516_v61 = vshrl.u32 %v6465_v51, 16 }
 0x125   : > { %v2495_v46 = vor.u32 %v2494_v22, %v8071_v5  ;;  %v2498_v8 = vshll.u32 %v6466_v0, 16  ;;  %v2522_v9 = vshll.u32 %v6467_v26, 16  ;;  %v5287_v62 = vcombine.low %v2443_v63, %v2453_v30 }
 0x126   : > { %v8089_v55 = vcombine.low %v2467_v48, %v2477_v4  ;;  %v2505_v6 = vrot.slane %v2503_v10, 4  ;;  %v5546_v15 = vrot.slane %v5530_v37, 9  ;;  %v2508_v25 = vrot.slane %v2506_v60, 5  ;;  %v6469_v10 = vld [vmem:[%s6656_s11 + $0xbc] sm:$0x1] }
 0x127   : > { %5877 = vmatmul.mubr.msk.bf16.gmra.mrb[28].mxu1 %vm335_vm1, %v6455_v31  ;;  %v4559_v18 = vrot.slane %v7743_v28, 5  ;;  %v4562_v41 = vrot.slane %v7753_v49, 5  ;;  %v5547_v40 = vrot.slane %v5531_v1, 9  ;;  %v2486_v32 = vrot.slane %v2485_v45, 4 }
 0x128   : > { %5898 = vmatprep.mubr.msk.bf16.mxu1 %vm335_vm1, %v5285_v19  ;;  %v8094_v12 = vrot.slane %v2512_v2, 5  ;;  %v2518_v33 = vrot.slane %v2516_v61, 4  ;;  %v4566_v23 = vrot.slane %v7760_v20, 5  ;;  %v2496_v53 = vrot.slane %v2495_v46, 4  ;;  %v6470_v2 = vld [vmem:[%s6656_s11 + $0xc4] sm:$0xf] }
 0x129   : > { %v2500_v38 = vrot.slane %v2498_v8, 5  ;;  %v8098_v56 = vrot.slane %v2522_v9, 5  ;;  %v4561_v19 = vrot.slane %v4559_v18, 4  ;;  %v4560_v28 = vsel %vm6840_vm7, %v5546_v15, %v4559_v18  ;;  %v5532_v46 = vld [vmem:[%s6656_s11 + $0xa8] sm:$0xe] }
 0x12a   : > { %6031 = vmatmul.mubr.msk.bf16.gmra.mrb[12].mxu0 %vm335_vm1, %v5560_v44  ;;  %v8108_v49 = vsel %vm6840_vm7, %v5547_v40, %v4566_v23  ;;  %v4568_v20 = vrot.slane %v4566_v23, 4  ;;  %v4569_v59 = vrot.slane %v7772_v11, 5  ;;  %v2509_v39 = vor.u32 %v2508_v25, %v2505_v6  ;;  %v5273_v44 = vld [vmem:[%s6656_s11 + $0xc0] sm:$0xf]  ;;  %v6468_v11 = vld [vmem:[%s6656_s11 + $0xb8] sm:$0xf] }
 0x12b   : > { %6034 = vmatprep.mubr.msk.bf16.mxu0 %vm335_vm1, %v5561_v36  ;;  %v4563_v13 = vsel %vm6840_vm7, %v4561_v19, %v4562_v41  ;;  %v2527_v52 = vshrl.u32 %v5270_v54, 16  ;;  %v2530_v17 = vshll.u32 %v5270_v54, 16  ;;  %v2491_v63 = vsel %vm6713_vm4, %v2486_v32, %v8071_v5 }
 0x12c   : > { %v2519_v30 = vor.u32 %v2518_v33, %v8094_v12  ;;  %v8121_v3 = vsel %vm6840_vm7, %v4568_v20, %v4569_v59  ;;  %v2536_v36 = vshll.u32 %v6468_v11, 16  ;;  %v5563_v31 = vcombine.low %v4560_v28, %v4563_v13  ;;  %v5534_v20 = vld [vmem:[%s6656_s11 + $0xc0] sm:$0xe] }
 0x12d   : > { %v5564_v43 = vcombine.low %v8108_v49, %v8121_v3  ;;  %v2529_v22 = vrot.slane %v2527_v52, 4  ;;  %v2532_v48 = vrot.slane %v2530_v17, 5  ;;  %v2540_v4 = vshrl.u32 %v6468_v11, 16  ;;  %v5535_v52 = vld [vmem:[%s6656_s11 + $0xcc] sm:$0xe] }
 0x12e   : > { %v2538_v5 = vrot.slane %v2536_v36, 5  ;;  %v2546_v60 = vshll.u32 %v6469_v10, 16  ;;  %v2551_v37 = vshrl.u32 %v5273_v44, 16  ;;  %v2554_v51 = vshll.u32 %v5273_v44, 16 }
 0x12f   : > { %5899 = vmatmul.mubr.msk.bf16.vlgmr.msra.gmra.mrb[16].mxu1 %vm335_vm1, %v8004_v35  ;;  %v2533_v45 = vor.u32 %v2532_v48, %v2529_v22  ;;  %v2560_v61 = vshll.u32 %v6470_v2, 16  ;;  %v2564_v1 = vshrl.u32 %v6470_v2, 16  ;;  %v2501_v0 = vsel %vm6713_vm4, %v2496_v53, %v2500_v38  ;;  %v6471_v53 = vld [vmem:[%s6656_s11 + $0xc8] sm:$0x1] }
 0x130   : > { %5902 = vmatprep.mubr.msk.bf16.mxu1 %vm335_vm1, %v5287_v62  ;;  %v2510_v8 = vrot.slane %v2509_v39, 4  ;;  %v2520_v26 = vrot.slane %v2519_v30, 4  ;;  %v2542_v35 = vrot.slane %v2540_v4, 4  ;;  %v2553_v6 = vrot.slane %v2551_v37, 4 }
 0x131   : > { %v2534_v9 = vrot.slane %v2533_v45, 4  ;;  %v2556_v15 = vrot.slane %v2554_v51, 5  ;;  %v2562_v25 = vrot.slane %v2560_v61, 5  ;;  %v2566_v18 = vrot.slane %v2564_v1, 4 }
 0x132   : > { %6035 = vmatmul.mubr.msk.bf16.gmra.mrb[16].mxu0 %vm335_vm1, %v5562_v34  ;;  %v2543_v62 = vor.u32 %v2542_v35, %v2538_v5  ;;  %v5548_v41 = vrot.slane %v5532_v46, 9  ;;  %v4573_v40 = vrot.slane %v7785_v27, 5  ;;  %v5289_v32 = vcombine.low %v2491_v63, %v2501_v0  ;;  %v5533_v34 = vld [vmem:[%s6656_s11 + $0xb4] sm:$0xe]  ;;  %s8207_s11 = scalar_lea.vmem [#allocation2], %s5046_s10 }
 0x133   : > { %6038 = vmatprep.mubr.msk.bf16.mxu0 %vm335_vm1, %v5563_v31  ;;  %v2548_v33 = vrot.slane %v2546_v60, 5  ;;  %v4576_v23 = vrot.slane %v7790_v58, 5  ;;  %v2570_v38 = vshll.u32 %v6471_v53, 16  ;;  %v2515_v19 = vsel %vm6713_vm4, %v2510_v8, %v8094_v12  ;;  %s4940_s19 = sshll.u32 %s8207_s11, 4  ;;  %s8273_s19 = int_to_ptr.vmem [resolvable:$true] %s4940_s19 }
 0x134   : > { %v2544_v54 = vrot.slane %v2543_v62, 4  ;;  %v4574_v7 = vsel %vm6840_vm7, %v5548_v41, %v4573_v40  ;;  %v4575_v57 = vrot.slane %v4573_v40, 4  ;;  %v2525_v27 = vsel %vm6713_vm4, %v2520_v26, %v8098_v56  ;;  %s6472_s27 = scalar_lea.vmem %s8273_s19, 4096  ;;  %p6479_p1 = scmp.lt.s32.totalorder %s8273_s19, %s6477_s29 }
 0x135   : > { %v2539_v58 = vsel %vm6713_vm4, %v2534_v9, %v2538_v5  ;;  %v4580_v28 = vrot.slane %v7802_v16, 5  ;;  %v2557_v59 = vor.u32 %v2556_v15, %v2553_v6  ;;  %v2567_v39 = vor.u32 %v2566_v18, %v2562_v25  ;;  %p6473_p12 = scmp.ne.s32.totalorder %s8273_s19, %s6472_s27  ;;  %p6480_p2 = scmp.lt.s32.totalorder %s6478_s30, %s6472_s27 }
 0x136   : > { %v4577_v13 = vsel %vm6840_vm7, %v4575_v57, %v4576_v23  ;;  %v4587_v12 = vrot.slane %v7820_v24, 5  ;;  %v2549_v56 = vsel %vm6713_vm4, %v2544_v54, %v2548_v33  ;;  %v5549_v44 = vrot.slane %v5533_v34, 9 }
 0x137   : > { %5903 = vmatmul.mubr.msk.bf16.gmra.mrb[20].mxu1 %vm335_vm1, %v8089_v55  ;;  %v5565_v17 = vcombine.low %v4574_v7, %v4577_v13  ;;  %v4583_v16 = vrot.slane %v7807_v50, 5  ;;  %v5290_v63 = vcombine.low %v2515_v19, %v2525_v27  ;;  %v2572_v30 = vrot.slane %v2570_v38, 5  ;;  %p6474_p13 = pnand %p6473_p12, %p6615_p4  ;;  %p6481_p3 = por %p6480_p2, %p6479_p1 }
 0x138   : > { %5906 = vmatprep.mubr.msk.bf16.mxu1 %vm335_vm1, %v5289_v32  ;;  %v4582_v55 = vrot.slane %v4580_v28, 4  ;;  %v5550_v11 = vrot.slane %v5534_v20, 9  ;;  %v4589_v36 = vrot.slane %v4587_v12, 4  ;;  %v4590_v31 = vrot.slane %v7823_v21, 5  ;;  %v8199_v32 = vld [vmem:[%s8328_s2] ss:$0 sm:$0xff] }
 0x139   : > { %v5551_v22 = vrot.slane %v5535_v52, 9  ;;  %v4594_v24 = vrot.slane %v7836_v14, 5  ;;  %v5291_v48 = vcombine.low %v2539_v58, %v2549_v56  ;;  %v2558_v5 = vrot.slane %v2557_v59, 4  ;;  %p6475_p0 = pneg %p6474_p13 }
 0x13a   : > { %6039 = vmatmul.mubr.msk.bf16.gmra.mrb[20].mxu0 %vm335_vm1, %v5564_v43  ;;  %v2568_v4 = vrot.slane %v2567_v39, 4  ;;  %v4597_v50 = vrot.slane %v7839_v29, 5  ;;  %v4581_v10 = vsel %vm6840_vm7, %v5549_v44, %v4580_v28  ;;  %v4584_v21 = vsel %vm6840_vm7, %v4582_v55, %v4583_v16 }
 0x13b   : > { %6042 = vmatprep.mubr.msk.bf16.mxu0 %vm335_vm1, %v5565_v17  ;;  %v4595_v14 = vsel %vm6840_vm7, %v5551_v22, %v4594_v24  ;;  %v4596_v60 = vrot.slane %v4594_v24, 4  ;;  %v4588_v49 = vsel %vm6840_vm7, %v5550_v11, %v4587_v12  ;;  %v4591_v3 = vsel %vm6840_vm7, %v4589_v36, %v4590_v31  ;;  %p6482_p5 = pnand %p6481_p3, %p6475_p0 }
 0x13c   : > { %v5566_v43 = vcombine.low %v4581_v10, %v4584_v21  ;;  %v2563_v45 = vsel %vm6713_vm4, %v2558_v5, %v2562_v25  ;;  %v2573_v51 = vsel %vm6713_vm4, %v2568_v4, %v2572_v30  ;;  %v5567_v2 = vcombine.low %v4588_v49, %v4591_v3 }
 0x13d   : > { %v4598_v29 = vsel %vm6840_vm7, %v4596_v60, %v4597_v50  ;;  %v5292_v61 = vcombine.low %v2563_v45, %v2573_v51 }
 0x13e   : > { %v5568_v37 = vcombine.low %v4595_v14, %v4598_v29 }
 0x13f   : > { %5907 = vmatmul.mubr.msk.bf16.gmra.mrb[24].mxu1 %vm335_vm1, %v5290_v63 }
 0x140   : > { %5910 = vmatprep.mubr.msk.bf16.mxu1 %vm335_vm1, %v5291_v48 }
 0x142   : > { %6043 = vmatmul.mubr.msk.bf16.gmra.mrb[24].mxu0 %vm335_vm1, %v5566_v43 }
 0x143   : > { %6046 = vmatprep.mubr.msk.bf16.mxu0 %vm335_vm1, %v5567_v2 }
 0x147   : > { %5911 = vmatmul.mubr.msk.bf16.gmra.mrb[28].mxu1 %vm335_vm1, %v5292_v61 }
 0x14a   : > { %6047 = vmatmul.mubr.msk.bf16.gmra.mrb[28].mxu0 %vm335_vm1, %v5568_v37 }
 0x1c2   : > { %v5850_v47 = vpop.f32.mrb[0].mxu1 }
 0x1c3   : > { %v1983_v1 = vpop.f32.mrb[1].mxu1  ;;  %v6052_v33 = vadd.f32 %v5850_v47, %v8199_v32 }
 0x1c4   : > { %v5851_v46 = vpop.f32.mrb[2].mxu1  ;;  %v6054_v23 = vadd.f32 %v8199_v32, %v1983_v1 }
 0x1c5   : > { %v1986_v0 = vpop.f32.mrb[3].mxu1  ;;  %v6056_v53 = vadd.f32 %v5851_v46, %v8199_v32 }
 0x1c6   : > { %v6058_v57 = vadd.f32 %v8199_v32, %v1986_v0 }
 0x1ca   : > { %v5854_v8 = vpop.f32.mrb[4].mxu1 }
 0x1cb   : > { %v1999_v26 = vpop.f32.mrb[5].mxu1  ;;  %v6060_v20 = vadd.f32 %v5854_v8, %v8199_v32 }
 0x1cc   : > { %v5855_v42 = vpop.f32.mrb[6].mxu1  ;;  %v6062_v59 = vadd.f32 %v8199_v32, %v1999_v26 }
 0x1cd   : > { %v2002_v35 = vpop.f32.mrb[7].mxu1  ;;  %v6064_v13 = vadd.f32 %v5855_v42, %v8199_v32 }
 0x1ce   : > { %v6066_v56 = vadd.f32 %v8199_v32, %v2002_v35 }
 0x1d2   : > { %v5858_v9 = vpop.f32.mrb[8].mxu1 }
 0x1d3   : > { %v2015_v6 = vpop.f32.mrb[9].mxu1  ;;  %v6068_v55 = vadd.f32 %v5858_v9, %v8199_v32 }
 0x1d4   : > { %v5859_v15 = vpop.f32.mrb[10].mxu1  ;;  %v6070_v11 = vadd.f32 %v8199_v32, %v2015_v6 }
 0x1d5   : > { %v2018_v25 = vpop.f32.mrb[11].mxu1  ;;  %v6072_v31 = vadd.f32 %v5859_v15, %v8199_v32 }
 0x1d6   : > { %v6074_v48 = vadd.f32 %v8199_v32, %v2018_v25 }
 0x1da   : > { %v5862_v62 = vpop.f32.mrb[12].mxu1 }
 0x1db   : > { %v2031_v18 = vpop.f32.mrb[13].mxu1  ;;  %v6076_v14 = vadd.f32 %v5862_v62, %v8199_v32 }
 0x1dc   : > { %v5863_v41 = vpop.f32.mrb[14].mxu1  ;;  %v6078_v60 = vadd.f32 %v8199_v32, %v2031_v18 }
 0x1dd   : > { %v2034_v40 = vpop.f32.mrb[15].mxu1  ;;  %v6080_v3 = vadd.f32 %v5863_v41, %v8199_v32 }
 0x1de   : > { %v6082_v37 = vadd.f32 %v8199_v32, %v2034_v40 }
 0x1e5   : > { %v6020_v54 = vpop.f32.mrb[0].mxu0 }
 0x1e6   : > { %v6053_v38 = vadd.f32 %v6052_v33, %v6020_v54  ;;  %v4734_v7 = vpop.f32.mrb[1].mxu0 }
 0x1e7   : > { %v6055_v34 = vadd.f32 %v6054_v23, %v4734_v7  ;;  %v6021_v19 = vpop.f32.mrb[2].mxu0 }
 0x1e8   : > { %4895 = vst [vmem:[%s8207_s11 + $0x10] sm:$0xff] %v6053_v38  ;;  %v6057_v27 = vadd.f32 %v6056_v53, %v6021_v19  ;;  %v4737_v58 = vpop.f32.mrb[3].mxu0 }
 0x1e9   : > { %4893 = vst [vmem:[%s8207_s11] sm:$0xff] %v6055_v34  ;;  %v6059_v28 = vadd.f32 %v6058_v57, %v4737_v58 }
 0x1ea   : > { %4896 = vst [vmem:[%s8207_s11 + $0x18] sm:$0xff] %v6057_v27 }
 0x1eb   : > { %4894 = vst [vmem:[%s8207_s11 + $0x8] sm:$0xff] %v6059_v28 }
 0x1ed   : > { %v6024_v39 = vpop.f32.mrb[4].mxu0 }
 0x1ee   : > { %v6061_v12 = vadd.f32 %v6060_v20, %v6024_v39  ;;  %v4750_v52 = vpop.f32.mrb[5].mxu0 }
 0x1ef   : > { %v6063_v17 = vadd.f32 %v6062_v59, %v4750_v52  ;;  %v6025_v44 = vpop.f32.mrb[6].mxu0 }
 0x1f0   : > { %4899 = vst [vmem:[%s8207_s11 + $0x30] sm:$0xff] %v6061_v12  ;;  %v6065_v16 = vadd.f32 %v6064_v13, %v6025_v44  ;;  %v4753_v63 = vpop.f32.mrb[7].mxu0 }
 0x1f1   : > { %4897 = vst [vmem:[%s8207_s11 + $0x20] sm:$0xff] %v6063_v17  ;;  %v6067_v30 = vadd.f32 %v6066_v56, %v4753_v63 }
 0x1f2   : > { %4900 = vst [vmem:[%s8207_s11 + $0x38] sm:$0xff] %v6065_v16 }
 0x1f3   : > { %4898 = vst [vmem:[%s8207_s11 + $0x28] sm:$0xff] %v6067_v30 }
 0x1f5   : > { %v6028_v36 = vpop.f32.mrb[8].mxu0 }
 0x1f6   : > { %v6069_v22 = vadd.f32 %v6068_v55, %v6028_v36  ;;  %v4766_v24 = vpop.f32.mrb[9].mxu0 }
 0x1f7   : > { %v6071_v5 = vadd.f32 %v6070_v11, %v4766_v24  ;;  %v6029_v4 = vpop.f32.mrb[10].mxu0 }
 0x1f8   : > { %4903 = vst [vmem:[%s8207_s11 + $0x50] sm:$0xff] %v6069_v22  ;;  %v6073_v50 = vadd.f32 %v6072_v31, %v6029_v4  ;;  %v4769_v10 = vpop.f32.mrb[11].mxu0 }
 0x1f9   : > { %4901 = vst [vmem:[%s8207_s11 + $0x40] sm:$0xff] %v6071_v5  ;;  %v6075_v21 = vadd.f32 %v6074_v48, %v4769_v10 }
 0x1fa   : > { %4904 = vst [vmem:[%s8207_s11 + $0x58] sm:$0xff] %v6073_v50 }
 0x1fb   : > { %4902 = vst [vmem:[%s8207_s11 + $0x48] sm:$0xff] %v6075_v21 }
 0x1fd   : > { %v6032_v49 = vpop.f32.mrb[12].mxu0 }
 0x1fe   : > { %v6077_v29 = vadd.f32 %v6076_v14, %v6032_v49  ;;  %v4782_v43 = vpop.f32.mrb[13].mxu0 }
 0x1ff   : > { %v6079_v45 = vadd.f32 %v6078_v60, %v4782_v43  ;;  %v6033_v51 = vpop.f32.mrb[14].mxu0 }
 0x200   : > { %4907 = vst [vmem:[%s8207_s11 + $0x70] sm:$0xff] %v6077_v29  ;;  %v6081_v2 = vadd.f32 %v6080_v3, %v6033_v51  ;;  %v4785_v61 = vpop.f32.mrb[15].mxu0 }
 0x201   : > { %4905 = vst [vmem:[%s8207_s11 + $0x60] sm:$0xff] %v6079_v45  ;;  %v6083_v1 = vadd.f32 %v6082_v37, %v4785_v61 }
 0x202   : > { %v5900_v47 = vpop.f32.mrb[16].mxu1  ;;  %4908 = vst [vmem:[%s8207_s11 + $0x78] sm:$0xff] %v6081_v2 }
 0x203   : > { %v2773_v46 = vpop.f32.mrb[17].mxu1  ;;  %4906 = vst [vmem:[%s8207_s11 + $0x68] sm:$0xff] %v6083_v1  ;;  %v6084_v8 = vadd.f32 %v5900_v47, %v8199_v32 }
 0x204   : > { %v5901_v0 = vpop.f32.mrb[18].mxu1  ;;  %v6086_v42 = vadd.f32 %v8199_v32, %v2773_v46 }
 0x205   : > { %v2776_v26 = vpop.f32.mrb[19].mxu1  ;;  %v6036_v35 = vpop.f32.mrb[16].mxu0  ;;  %v6088_v9 = vadd.f32 %v5901_v0, %v8199_v32 }
 0x206   : > { %v6085_v6 = vadd.f32 %v6084_v8, %v6036_v35  ;;  %v4798_v15 = vpop.f32.mrb[17].mxu0  ;;  %v6090_v25 = vadd.f32 %v8199_v32, %v2776_v26 }
 0x207   : > { %v6087_v62 = vadd.f32 %v6086_v42, %v4798_v15  ;;  %v6037_v18 = vpop.f32.mrb[18].mxu0 }
 0x208   : > { %4911 = vst [vmem:[%s8207_s11 + $0x90] sm:$0xff] %v6085_v6  ;;  %v6089_v41 = vadd.f32 %v6088_v9, %v6037_v18  ;;  %v4801_v40 = vpop.f32.mrb[19].mxu0 }
 0x209   : > { %4909 = vst [vmem:[%s8207_s11 + $0x80] sm:$0xff] %v6087_v62  ;;  %v6091_v23 = vadd.f32 %v6090_v25, %v4801_v40 }
 0x20a   : > { %v5904_v33 = vpop.f32.mrb[20].mxu1  ;;  %4912 = vst [vmem:[%s8207_s11 + $0x98] sm:$0xff] %v6089_v41 }
 0x20b   : > { %v2789_v54 = vpop.f32.mrb[21].mxu1  ;;  %4910 = vst [vmem:[%s8207_s11 + $0x88] sm:$0xff] %v6091_v23  ;;  %v6092_v38 = vadd.f32 %v5904_v33, %v8199_v32 }
 0x20c   : > { %v5905_v53 = vpop.f32.mrb[22].mxu1  ;;  %v6094_v57 = vadd.f32 %v8199_v32, %v2789_v54 }
 0x20d   : > { %v2792_v7 = vpop.f32.mrb[23].mxu1  ;;  %v6040_v34 = vpop.f32.mrb[20].mxu0  ;;  %v6096_v19 = vadd.f32 %v5905_v53, %v8199_v32 }
 0x20e   : > { %v6093_v27 = vadd.f32 %v6092_v38, %v6040_v34  ;;  %v4814_v58 = vpop.f32.mrb[21].mxu0  ;;  %v6098_v28 = vadd.f32 %v8199_v32, %v2792_v7 }
 0x20f   : > { %v6095_v20 = vadd.f32 %v6094_v57, %v4814_v58  ;;  %v6041_v59 = vpop.f32.mrb[22].mxu0 }
 0x210   : > { %4915 = vst [vmem:[%s8207_s11 + $0xb0] sm:$0xff] %v6093_v27  ;;  %v6097_v39 = vadd.f32 %v6096_v19, %v6041_v59  ;;  %v4817_v13 = vpop.f32.mrb[23].mxu0 }
 0x211   : > { %4913 = vst [vmem:[%s8207_s11 + $0xa0] sm:$0xff] %v6095_v20  ;;  %v6099_v52 = vadd.f32 %v6098_v28, %v4817_v13 }
 0x212   : > { %v5908_v12 = vpop.f32.mrb[24].mxu1  ;;  %4916 = vst [vmem:[%s8207_s11 + $0xb8] sm:$0xff] %v6097_v39 }
 0x213   : > { %v2805_v56 = vpop.f32.mrb[25].mxu1  ;;  %4914 = vst [vmem:[%s8207_s11 + $0xa8] sm:$0xff] %v6099_v52  ;;  %v6100_v44 = vadd.f32 %v5908_v12, %v8199_v32 }
 0x214   : > { %v5909_v17 = vpop.f32.mrb[26].mxu1  ;;  %v6102_v63 = vadd.f32 %v8199_v32, %v2805_v56 }
 0x215   : > { %v2808_v16 = vpop.f32.mrb[27].mxu1  ;;  %v6044_v30 = vpop.f32.mrb[24].mxu0  ;;  %v6104_v55 = vadd.f32 %v5909_v17, %v8199_v32 }
 0x216   : > { %v6101_v11 = vadd.f32 %v6100_v44, %v6044_v30  ;;  %v4830_v36 = vpop.f32.mrb[25].mxu0  ;;  %v6106_v31 = vadd.f32 %v8199_v32, %v2808_v16 }
 0x217   : > { %v6103_v22 = vadd.f32 %v6102_v63, %v4830_v36  ;;  %v6045_v24 = vpop.f32.mrb[26].mxu0 }
 0x218   : > { %4919 = vst [vmem:[%s8207_s11 + $0xd0] sm:$0xff] %v6101_v11  ;;  %v6105_v48 = vadd.f32 %v6104_v55, %v6045_v24  ;;  %v4833_v5 = vpop.f32.mrb[27].mxu0 }
 0x219   : > { %4917 = vst [vmem:[%s8207_s11 + $0xc0] sm:$0xff] %v6103_v22  ;;  %v6107_v50 = vadd.f32 %v6106_v31, %v4833_v5 }
 0x21a   : > { %v5912_v4 = vpop.f32.mrb[28].mxu1  ;;  %4920 = vst [vmem:[%s8207_s11 + $0xd8] sm:$0xff] %v6105_v48 }
 0x21b   : > { %v2821_v10 = vpop.f32.mrb[29].mxu1  ;;  %4918 = vst [vmem:[%s8207_s11 + $0xc8] sm:$0xff] %v6107_v50  ;;  %v6108_v14 = vadd.f32 %v5912_v4, %v8199_v32 }
 0x21c   : > { %v5913_v21 = vpop.f32.mrb[30].mxu1  ;;  %v6110_v49 = vadd.f32 %v8199_v32, %v2821_v10 }
 0x21d   : > { %v2824_v60 = vpop.f32.mrb[31].mxu1  ;;  %v6048_v3 = vpop.f32.mrb[28].mxu0  ;;  %v6112_v29 = vadd.f32 %v5913_v21, %v8199_v32 }
 0x21e   : > { %v6109_v43 = vadd.f32 %v6108_v14, %v6048_v3  ;;  %v4846_v37 = vpop.f32.mrb[29].mxu0  ;;  %v6114_v45 = vadd.f32 %v8199_v32, %v2824_v60 }
 0x21f   : > { %v6111_v51 = vadd.f32 %v6110_v49, %v4846_v37  ;;  %v6049_v2 = vpop.f32.mrb[30].mxu0 }
 0x220   : > { %4923 = vst [vmem:[%s8207_s11 + $0xf0] sm:$0xff] %v6109_v43  ;;  %v6113_v61 = vadd.f32 %v6112_v29, %v6049_v2  ;;  %v4849_v47 = vpop.f32.mrb[31].mxu0 }
 0x221   : > { %4921 = vst [vmem:[%s8207_s11 + $0xe0] sm:$0xff] %v6111_v51  ;;  %v6115_v1 = vadd.f32 %v6114_v45, %v4849_v47 }
 0x222   : > { %4924 = vst [vmem:[%s8207_s11 + $0xf8] sm:$0xff] %v6113_v61 }
 0x223   : > { %4922 = vst [vmem:[%s8207_s11 + $0xe8] sm:$0xff] %v6115_v1 }
 0x224   : > { %6485 = shalt.err (!%p6482_p5)
}
 0x225   : > { %s6486_s4 = scalar_lea.hbm %s8271_s26, 4096  ;;  %s6490_s7 = scalar_lea.hbm %s8329_s3, 8192 }
 0x226   : > { %p6487_p6 = scmp.ne.s32.totalorder %s8271_s26, %s6486_s4  ;;  %p6491_p10 = scmp.lt.u32.totalorder %s8271_s26, %s8329_s3 }
 0x227   : > { %p6492_p11 = scmp.lt.u32.totalorder %s6490_s7, %s6486_s4  ;;  %p6494_p13 = scmp.lt.u32.totalorder %s6486_s4, %s8271_s26 }
 0x228   : > { %p6488_p7 = pnand %p6487_p6, %p6615_p4 }
 0x229   : > { %p6493_p12 = por %p6492_p11, %p6491_p10 }
 0x22a   : > { %p6489_p9 = pneg %p6488_p7 }
 0x22b   : > { %p6495_p0 = por %p6494_p13, %p6493_p12 }
 0x22d   : > { %p6496_p1 = pnand %p6495_p0, %p6489_p9 }
 0x22f   : > { %6499 = shalt.err (!%p6496_p1)
}
 0x230   : > { %s6553_s10 = smov 128   ;;  %s6554_s11 = smov 8  }
 0x231   : > { %6351 = dma.vmem_to_hbm [thread:$0]  (%p6615_p4), %s8273_s19, 4096, %s8271_s26, %s8280_s15, %s6553_s10, %s6553_s10, %s6554_s11  }
 0x232 PF: > { %p6357_p2 = scmp.ge.s32.totalorder %s6550_s17, 2  ;;  %s4955_s18 = sand.u32 1, %s6530_s12  }
 0x233   : > { %s4956_s21 = scalar_lea.sflag [#allocation3], %s4955_s18 }
 0x234   : > { %p6354_p3 = pnand %p6357_p2, %p6622_p8 }
 0x236   : > { %6525 = dma.done.wait (!%p6354_p3), %s4956_s21, 4096  }
 0x237   : > { %6527 = vsyncadd (!%p6354_p3), %s4956_s21, 4294963200  ;;  %s16_s17 = sadd.s32 1, %s6550_s17   ;;  %s8338_s12 = smov %s6534_s13 }
 0x238   : > { %p13_p5 = scmp.ge.s32.totalorder %s16_s17, 4   ;;  %s8339_s13 = smov %s6538_s14 }
 0x239   : > { %s8340_s14 = smov %s6628_s25  ;;  %s8341_s15 = smov %s6546_s16 }
 0x23a   : > { %s8342_s16 = smov %s8344_s20  ;;  %15 = sbr.rel (!%p13_p5) target bundleno = 4 (0x4), region = 83 }
 0x241   :  { %4961 = vsyncpa [#allocation3], 1 }
 0x242   :  { %4963 = vsyncpa [#allocation3 + $0x1], 1 }

</bundles_post_ra>
